<compile_context>
chip_gen: v6e
topology: v6e:2x2x1
jax: 0.10.0
libtpu: 0.0.40
codegen_flags: <defaults>
</compile_context>

<pallas_src>
import jax
import jax.numpy as jnp
from jax.experimental import pallas as pl
from jax.experimental.pallas import tpu as pltpu


_TINY_BYTES = 256 * 1024               # below this, fused XLA beats kernel launch
_MEGACORE_MIN_BYTES = 2 * 1024 * 1024  # above this, force >= 2 row blocks (v7x megacore)


def _round_up(a, b):
    return (a + b - 1) // b * b


def _sublane_multiple(dtype):
    # vreg sublanes are 32-bit; sub-32-bit dtypes pack along sublanes.
    return max(8, 32 // jnp.dtype(dtype).itemsize)


def _block_budget():
    """(target block bytes, scoped-VMEM limit bytes), per TPU generation."""
    try:
        vmem_cap = pltpu.get_tpu_info().vmem_capacity_bytes
    except Exception:
        vmem_cap = 64 * 1024 * 1024  # be conservative (v7x-sized VMEM)
    if vmem_cap >= 128 * 1024 * 1024:              # v5e / v6e
        return 8 * 1024 * 1024, 48 * 1024 * 1024
    return 4 * 1024 * 1024, 32 * 1024 * 1024       # v7x (64 MiB physical) / unknown


def _feature_dropout_kernel(x_ref, mask_ref, o_ref):
    # x_ref:    (row_tile, lane_tile) tile of the flattened input
    # mask_ref: (row_tile, 1) per-feature-map keep mask (0/1), lane-broadcast.
    o_ref[...] = x_ref[...] * mask_ref[...]


def feature_dropout_no_scaling(x, mask_nc):
    """x: (N, C, H, W); mask_nc: (N*C,) keep mask (0/1, x.dtype). Zeros whole
    feature maps where mask == 0, without rescaling kept maps."""
    N, C, H, W = x.shape
    dtype = x.dtype
    itemsize = jnp.dtype(dtype).itemsize
    NC, HW = N * C, H * W
    total_bytes = NC * HW * itemsize

    # Tiny inputs: kernel-launch + reshape overhead dominates -> let XLA fuse.
    if total_bytes < _TINY_BYTES:
        return x * mask_nc.reshape(N, C, 1, 1)

    target_block_bytes, vmem_limit = _block_budget()
    sub = _sublane_multiple(dtype)

    # Balanced row tiling: pick the number of row blocks, then size tiles so
    # the last block is nearly full (no dead DMA rows, no host-side padding).
    n_row_blocks = max(1, pl.cdiv(total_bytes, target_block_bytes))
    if total_bytes > _MEGACORE_MIN_BYTES:
        n_row_blocks = max(n_row_blocks, 2)  # let v7x megacore split the row axis
    if n_row_blocks == 1:
        row_tile = NC  # block dim == full array dim: always legal
    else:
        row_tile = min(_round_up(pl.cdiv(NC, n_row_blocks), sub), NC)

    # Keep full, contiguous rows per block (contiguous HBM DMA).  Only split
    # lanes if even a minimal row block would blow the budget (huge spatial).
    lane_tile = HW
    if row_tile * lane_tile * itemsize > 2 * target_block_bytes:
        lane_tile = max(128, (target_block_bytes // (row_tile * itemsize)) // 128 * 128)
        lane_tile = min(lane_tile, HW)

    grid = (pl.cdiv(NC, row_tile), pl.cdiv(HW, lane_tile))

    x2d = x.reshape(NC, HW)
    mask2d = mask_nc.reshape(NC, 1).astype(dtype)

    out2d = pl.pallas_call(
        _feature_dropout_kernel,
        out_shape=jax.ShapeDtypeStruct((NC, HW), dtype),
        grid_spec=pltpu.PrefetchScalarGridSpec(
            num_scalar_prefetch=0,
            grid=grid,
            in_specs=[
                pl.BlockSpec((row_tile, lane_tile), lambda i, j: (i, j)),
                pl.BlockSpec((row_tile, 1), lambda i, j: (i, 0)),
            ],
            out_specs=pl.BlockSpec((row_tile, lane_tile), lambda i, j: (i, j)),
        ),
        # Note: input_output_aliases={0: 0} would halve peak HBM footprint, but
        # without caller-side donation XLA inserts a copy-on-alias (an extra
        # full HBM pass), so it is intentionally left to callers that donate x.
        compiler_params=pltpu.CompilerParams(
            # Leading row axis parallel -> v7x megacore splits contiguous row
            # ranges across its two TensorCores; lane axis is independent too.
            dimension_semantics=("parallel", "parallel"),
            vmem_limit_bytes=vmem_limit,
        ),
    )(x2d, mask2d)

    return out2d.reshape(N, C, H, W)


def random_dropout(x, key, p=0.5, training=True):
    """JAX/Pallas equivalent of RandomDropout.forward.

    theta ~ U(0, p); each (n, c) feature map is dropped (zeroed) with
    probability theta, without rescaling kept maps.  Identity in eval mode.
    """
    if not training:
        return x
    N, C = x.shape[0], x.shape[1]
    k_theta, k_mask = jax.random.split(key)
    theta = jax.random.uniform(k_theta, (), minval=0.0, maxval=p)
    # Keep a feature map with probability (1 - theta).
    keep = (jax.random.uniform(k_mask, (N * C,)) >= theta).astype(x.dtype)
    # TODO(synk): `inplace=True` has no meaning under JAX's functional semantics.
    return feature_dropout_no_scaling(x, keep)


if __name__ == "__main__":
    key = jax.random.PRNGKey(0)
    k_x, k_drop = jax.random.split(key)

    # Small NCHW input consistent with the module's usage (tiny-input bypass path).
    N, C, H, W = 2, 4, 16, 16
    x = jax.random.normal(k_x, (N, C, H, W), dtype=jnp.float32)
    out = jax.block_until_ready(random_dropout(x, k_drop, p=0.5, training=True))

    xm = x.reshape(N * C, -1)
    om = out.reshape(N * C, -1)
    kept = jnp.all(om == xm, axis=1)
    dropped = jnp.all(om == 0.0, axis=1)
    assert bool(jnp.all(kept | dropped)), "feature dropout semantics violated"

    # Eval mode is identity.
    out_eval = jax.block_until_ready(random_dropout(x, k_drop, p=0.5, training=False))
    assert bool(jnp.all(out_eval == x))

    # Unaligned shape exercising the Pallas path with partial edge blocks on
    # both the row axis (NC=600 split into blocks of 304) and the lane axis
    # (HW=1089, not a multiple of 128) -- no host-side padding anywhere.
    N2, C2, H2, W2 = 4, 150, 33, 33
    x2 = jax.random.normal(k_x, (N2, C2, H2, W2), dtype=jnp.float32)
    out2 = jax.block_until_ready(random_dropout(x2, k_drop, p=0.5, training=True))
    xm2 = x2.reshape(N2 * C2, -1)
    om2 = out2.reshape(N2 * C2, -1)
    kept2 = jnp.all(om2 == xm2, axis=1)
    dropped2 = jnp.all(om2 == 0.0, axis=1)
    assert bool(jnp.all(kept2 | dropped2)), "tiled-path feature dropout violated"

    print("KERNEL_OK")
</pallas_src>

<mosaic_0001>
module attributes {stable_mosaic.version = 11 : i64} {
  func.func @_feature_dropout_kernel(%arg0: i32, %arg1: i32, %arg2: memref<304x1089xf32, #tpu.memory_space<vmem>>, %arg3: memref<304x1xf32, #tpu.memory_space<vmem>>, %arg4: memref<304x1089xf32, #tpu.memory_space<vmem>>) attributes {dimension_semantics = [#tpu.dimension_semantics<parallel>, #tpu.dimension_semantics<parallel>], iteration_bounds = array<i64: 2, 1>, scalar_prefetch = 0 : i64, scratch_operands = 0 : i64, tpu.core_type = #tpu.core_type<tc>, window_params = [{transform_indices = @transform_0, window_bounds = array<i64: 304, 1089>}, {transform_indices = @transform_1, window_bounds = array<i64: 304, 1>}, {transform_indices = @transform_2, window_bounds = array<i64: 304, 1089>}]} {
    %c0 = arith.constant 0 : index
    %c0_0 = arith.constant 0 : index
    %0 = vector.load %arg2[%c0, %c0_0] : memref<304x1089xf32, #tpu.memory_space<vmem>>, vector<304x1089xf32>
    %c0_1 = arith.constant 0 : index
    %c0_2 = arith.constant 0 : index
    %1 = vector.load %arg3[%c0_1, %c0_2] : memref<304x1xf32, #tpu.memory_space<vmem>>, vector<304x1xf32>
    %2 = vector.broadcast %1 : vector<304x1xf32> to vector<304x1089xf32>
    %3 = arith.mulf %0, %2 : vector<304x1089xf32>
    %c0_3 = arith.constant 0 : index
    %c0_4 = arith.constant 0 : index
    %4 = vector.load %arg4[%c0_3, %c0_4] : memref<304x1089xf32, #tpu.memory_space<vmem>>, vector<304x1089xf32>
    tpu.vector_store %arg4[%c0_3, %c0_4], %3 {strides = array<i32>} : memref<304x1089xf32, #tpu.memory_space<vmem>>, vector<304x1089xf32>,
    return
  }
  func.func @transform_0(%arg0: i32, %arg1: i32) -> (i32, i32) {
    %c0_i32 = arith.constant 0 : i32
    return %arg0, %arg1 : i32, i32
  }
  func.func @transform_1(%arg0: i32, %arg1: i32) -> (i32, i32) {
    %c0_i32 = arith.constant 0 : i32
    %c0_i32_0 = arith.constant 0 : i32
    return %arg0, %c0_i32 : i32, i32
  }
  func.func @transform_2(%arg0: i32, %arg1: i32) -> (i32, i32) {
    %c0_i32 = arith.constant 0 : i32
    return %arg0, %arg1 : i32, i32
  }
}

</mosaic_0001>

<bundles_post_ra>
// kernel: tpu_custom_call.1
= control target key start
LH: loop header
LB: loop body
LE: loop exit
PB: predicated region body
PF: predicated region fallthrough
CT: control target
= control target key end

     0   :  { %7 = vsyncpa [#allocation3], 0  ;;  %s3100_s0 = inlined_call_operand.hbm [shape: f32[600,1089], index: 0, kind: input, shape index: {}]   ;;  %s3101_s1 = inlined_call_operand.vmem [shape: f32[600,1], index: 1, kind: input, shape index: {}]   ;;  %s3102_s2 = inlined_call_operand.hbm [shape: f32[600,1089], index: 2, kind: output, shape index: {}]  }
   0x1   :  { %9 = vsyncpa [#allocation3 + $0x1], 0 }
   0x2   :  { %10 = vsyncpa [#allocation4], 0 }
   0x3   :  { %12 = vsyncpa [#allocation4 + $0x1], 0  ;;  %s1838_s9 = smov 0   ;;  %s1840_s10 = smov 0  }
   0x4   :  { %s1842_s11 = smov 0   ;;  %s1844_s12 = smov 0  }
   0x5   :  { %s1846_s13 = smov 0   ;;  %s1848_s14 = smov 0  }
   0x6 LB: > { %s1622_s15 = sadd.s32 4294967295, %s1814_s14   ;;  %s1623_s16 = sadd.s32 4294967294, %s1814_s14   ;;  %s1814_s14 = sphi %s1848_s14, %s18_s14   ;;  %s1810_s13 = sphi %s1846_s13, %s3112_s13   ;;  %s1806_s12 = sphi %s1844_s12, %s3111_s12   ;;  %s1802_s11 = sphi %s1842_s11, %s3110_s11   ;;  %s1798_s10 = sphi %s1840_s10, %s3109_s10   ;;  %s1794_s9 = sphi %s1838_s9, %s3108_s9  }
   0x7   : > { %s30_s17 = sadd.s32 1, %s1810_s13  ;;  %s39_s18 = sadd.s32 1, %s1802_s11 }
   0x8   : > { %p32_p0 = scmp.ge.s32.totalorder %s30_s17, 2  ;;  %p46_p1 = scmp.ne.s32.totalorder %s1802_s11, %s1798_s10 }
   0x9   : > { %p47_p2 = scmp.eq.s32.totalorder %s1814_s14, 0  ;;  %p52_p3 = scmp.ne.s32.totalorder %s1798_s10, %s1794_s9 }
   0xa   : > { %s3114_s17 = smov (%p32_p0, %s30_s17), 0  ;;  %p53_p5 = scmp.eq.s32.totalorder %s1622_s15, 0 }
   0xb   : > { %p48_p4 = por %p47_p2, %p46_p1  ;;  %s34_s19 = ssub.s32 %s1810_s13, %s3114_s17 }
   0xc   : > { %p104_p6 = scmp.eq.s32.totalorder %s1622_s15, 1  ;;  %p37_p7 = scmp.eq.s32.totalorder %s34_s19, 0 }
   0xd   : > { %p1881_p8 = por %p53_p5, %p52_p3  ;;  %p110_p10 = scmp.eq.s32.totalorder %s1623_s16, 1 }
   0xe   : > { %p1885_p9 = por %p104_p6, %p46_p1  ;;  %p3103_p12 = scmp.ge.s32.totalorder %s1814_s14, 2 }
   0xf   : > { %s1890_s22 = scalar_select %p37_p7, %s1802_s11, %s39_s18  }
  0x10   : > { %p1892_p11 = por %p110_p10, %p52_p3  ;;  %126 = sbr.rel (%p3103_p12) target bundleno = 56 (0x38), region = 16 }
  0x15   : > { %129 = sbr.rel (!%p48_p4) target bundleno = 56 (0x38), region = 20  ;;  %s130_s24 = sand.u32 (%p48_p4), 1, %s1802_s11  }
  0x16   : > { %s135_s25 = smul.u32 (%p48_p4), 38, %s1810_s13  ;;  %s1904_s30 = scalar_lea.sflag (%p48_p4), [#allocation3], %s130_s24 }
  0x17   : > { %s1640_s26 = smul.u32 (%p48_p4), 2736, %s130_s24 }
  0x18   : > { %s137_s27 = ssub.s32 (%p48_p4), 75, %s135_s25 }
  0x19   : > { %p138_p13 = scmp.lt.s32.totalorder (%p48_p4), %s137_s27, 38  ;;  %s134_s3 = scalar_lea.vmem (%p48_p4), [#allocation2], %s1640_s26 }
  0x1b   : > { %s3116_s27 = smov (!%p138_p13, %s137_s27), 38 }
  0x1c   : > { %s1901_s28 = smul.u32 1152, %s3116_s27 }
  0x1e   : > { %s143_s29 = ssub.s32 43776, %s1901_s28 }
  0x1f   : > { %144 = vsyncadd %s1904_s30, %s143_s29  ;;  %p1628_p0 = scmp.ne.s32.totalorder %s1901_s28, 0  ;;  %s1650_s4 = smul.u32 43776, %s1810_s13 }
  0x20   : > { %s151_s5 = sshll.u32 %s134_s3, 4  ;;  %s1712_s19 = scalar_lea.hbm %s3100_s0, 86400  ;;  %s1914_s5 = int_to_ptr.vmem [resolvable:$true] %s151_s5 }
  0x21   : > { %s1912_s8 = scalar_lea.hbm %s3100_s0, %s1650_s4 }
  0x22   : > { %s1708_s15 = scalar_lea.hbm %s1912_s8, %s1901_s28 }
  0x23   : > { %p1709_p1 = scmp.ne.s32.totalorder %s1912_s8, %s1708_s15  ;;  %p1714_p4 = scmp.lt.s32.totalorder %s1712_s19, %s1708_s15 }
  0x25   : > { %p1710_p2 = pnand %p1709_p1, %p1628_p0 }
  0x27   : > { %p1711_p3 = pneg %p1710_p2 }
  0x29   : > { %p1716_p5 = pnand %p1714_p4, %p1711_p3 }
  0x2b   : > { %1719 = shalt.err (!%p1716_p5)
}
  0x2c   : > { %s1720_s24 = scalar_lea.vmem %s1914_s5, %s1901_s28  ;;  %s1816_s25 = smov [#allocation2]  }
  0x2d   : > { %p1721_p6 = scmp.ne.s32.totalorder %s1914_s5, %s1720_s24  ;;  %s1724_s26 = sshll.u32 %s1816_s25, 4  ;;  %s1725_s26 = int_to_ptr.vmem [resolvable:$false] %s1724_s26 }
  0x2e   : > { %s1726_s27 = scalar_lea.vmem %s1725_s26, 87552  ;;  %p1727_p13 = scmp.lt.s32.totalorder %s1914_s5, %s1725_s26 }
  0x2f   : > { %p1722_p7 = pnand %p1721_p6, %p1628_p0  ;;  %p1728_p1 = scmp.lt.s32.totalorder %s1726_s27, %s1720_s24 }
  0x31   : > { %p1723_p10 = pneg %p1722_p7  ;;  %p1729_p2 = por %p1728_p1, %p1727_p13 }
  0x33   : > { %p1730_p12 = pnand %p1729_p2, %p1723_p10 }
  0x35   : > { %1733 = shalt.err (!%p1730_p12)
}
  0x36   : > { %s1817_s29 = smov 1152   ;;  %s1818_s3 = smov 72  }
  0x37   : > { %157 = dma.hbm_to_vmem [thread:$0]  (%p1628_p0), %s1912_s8, %s1901_s28, %s1914_s5, %s1904_s30, %s1817_s29, %s1817_s29, %s1818_s3  }
  0x38 PF: > { %p1631_p3 = scmp.ge.s32.totalorder %s1814_s14, 1  ;;  %p176_p4 = scmp.lt.s32.totalorder %s1814_s14, 3 }
  0x3a   : > { %p177_p5 = pnand %p1631_p3, %p176_p4 }
  0x3b   : > { %s1939_s4 = sand.u32 (!%p177_p5), 1, %s1798_s10  }
  0x3c   : > { %180 = sbr.rel (%p177_p5) target bundleno = 400 (0x190), region = 28  ;;  %s183_s7 = scalar_lea.sflag (!%p177_p5), [#allocation3], %s1939_s4 }
  0x3d   : > { %s1642_s6 = smul.u32 (!%p177_p5), 2736, %s1939_s4 }
  0x3f   : > { %s1945_s15 = scalar_lea.vmem (!%p177_p5), [#allocation2], %s1642_s6 }
  0x41   : > { %1785 = dma.done.wait (%p1881_p8), %s183_s7, 43776  }
  0x42   : > { %1787 = vsyncadd (%p1881_p8), %s183_s7, 4294923520  ;;  %s1952_s28 = smul.u32 38, %s1806_s12  ;;  %v1819_v0 = vmov 0   ;;  %v262_v39 = vld [vmem:[%s1945_s15 + $0x90] sm:$0xff]  ;;  %v263_v40 = vld [vmem:[%s1945_s15 + $0x98] sm:$0xff]  ;;  %vm1164_vm0 = vcmask 531456  }
  0x43   : > { %1707 = vset.pattern.permute.xlu1 %v1819_v0  ;;  %1706 = vset.pattern.permute.xlu0 %v1819_v0  ;;  %v264_v41 = vld [vmem:[%s1945_s15 + $0xa0] sm:$0xff]  ;;  %v265_v42 = vld [vmem:[%s1945_s15 + $0xa8] sm:$0xff]  ;;  %v266_v43 = vld [vmem:[%s1945_s15 + $0xb0] sm:$0xff]  ;;  %s2029_s20 = scalar_lea.vmem [#allocation5], %s1642_s6  ;;  %s1500_s19 = scalar_lea.sflag [#allocation4], %s1939_s4 }
  0x44   : > { %p228_p12 = scmp.lt.s32.totalorder %s1952_s28, 74  ;;  %v267_v44 = vld [vmem:[%s1945_s15 + $0xb8] sm:$0xff]  ;;  %v268_v45 = vld [vmem:[%s1945_s15 + $0xc0] sm:$0xff]  ;;  %v269_v46 = vld [vmem:[%s1945_s15 + $0xc8] sm:$0xff]  ;;  %s1509_s24 = ssub.s32 (%p1885_p9), 75, %s1952_s28 }
  0x45   : > { %v270_v47 = vld [vmem:[%s1945_s15 + $0xd0] sm:$0xff]  ;;  %v244_v48 = vld [vmem:[%s1945_s15] sm:$0xff]  ;;  %v245_v49 = vld [vmem:[%s1945_s15 + $0x8] sm:$0xff]  ;;  %p1510_p8 = scmp.lt.s32.totalorder (%p1885_p9), %s1509_s24, 38 }
  0x46   : > { %s229_s30 = scalar_select %p228_p12, %s1952_s28, 74  ;;  %v246_v50 = vld [vmem:[%s1945_s15 + $0x10] sm:$0xff]  ;;  %v247_v51 = vld [vmem:[%s1945_s15 + $0x18] sm:$0xff]  ;;  %v248_v52 = vld [vmem:[%s1945_s15 + $0x20] sm:$0xff] }
  0x47   : > { %v249_v53 = vld [vmem:[%s1945_s15 + $0x28] sm:$0xff]  ;;  %v250_v54 = vld [vmem:[%s1945_s15 + $0x30] sm:$0xff]  ;;  %v251_v57 = vld [vmem:[%s1945_s15 + $0x38] sm:$0xff] }
  0x48   : > { %s1632_s5 = sshll.u32 %s229_s30, 3  ;;  %v252_v58 = vld [vmem:[%s1945_s15 + $0x40] sm:$0xff]  ;;  %v271_v59 = vld [vmem:[%s1945_s15 + $0xd8] sm:$0xff] }
  0x49   : > { %s1959_s18 = scalar_lea.vmem %s3101_s1, %s1632_s5  ;;  %v272_v60 = vld [vmem:[%s1945_s15 + $0xe0] sm:$0xff] }
  0x4a   : > { %v588_v1 = vld [vmem:[%s1959_s18 + $0x10] sm:$0xff]  ;;  %v586_v2 = vld [vmem:[%s1959_s18] sm:$0xff]  ;;  %v589_v3 = vld [vmem:[%s1959_s18 + $0x18] sm:$0xff] }
  0x4b   : > { %636 = vperm.xlu1 %1707, %v588_v1   ;;  %626 = vperm.xlu0 %1706, %v586_v2   ;;  %v587_v4 = vld [vmem:[%s1959_s18 + $0x8] sm:$0xff]  ;;  %v590_v6 = vld [vmem:[%s1959_s18 + $0x20] sm:$0xff]  ;;  %v593_v7 = vld [vmem:[%s1959_s18 + $0x38] sm:$0xff] }
  0x4c   : > { %v591_v5 = vld [vmem:[%s1959_s18 + $0x28] sm:$0xff]  ;;  %v592_v8 = vld [vmem:[%s1959_s18 + $0x30] sm:$0xff]  ;;  %v594_v10 = vld [vmem:[%s1959_s18 + $0x40] sm:$0xff] }
  0x4d   : > { %v595_v9 = vld [vmem:[%s1959_s18 + $0x48] sm:$0xff]  ;;  %v597_v11 = vld [vmem:[%s1959_s18 + $0x58] sm:$0xff]  ;;  %v596_v12 = vld [vmem:[%s1959_s18 + $0x50] sm:$0xff] }
  0x4e   : > { %v599_v13 = vld [vmem:[%s1959_s18 + $0x68] sm:$0xff]  ;;  %v598_v14 = vld [vmem:[%s1959_s18 + $0x60] sm:$0xff]  ;;  %v601_v15 = vld [vmem:[%s1959_s18 + $0x78] sm:$0xff] }
  0x4f   : > { %641 = vperm.xlu1 %1707, %v589_v3   ;;  %631 = vperm.xlu0 %1706, %v587_v4   ;;  %v600_v16 = vld [vmem:[%s1959_s18 + $0x70] sm:$0xff]  ;;  %v603_v17 = vld [vmem:[%s1959_s18 + $0x88] sm:$0xff]  ;;  %v602_v18 = vld [vmem:[%s1959_s18 + $0x80] sm:$0xff] }
  0x50   : > { %v605_v19 = vld [vmem:[%s1959_s18 + $0x98] sm:$0xff]  ;;  %v604_v20 = vld [vmem:[%s1959_s18 + $0x90] sm:$0xff]  ;;  %v607_v21 = vld [vmem:[%s1959_s18 + $0xa8] sm:$0xff] }
  0x51   : > { %v606_v22 = vld [vmem:[%s1959_s18 + $0xa0] sm:$0xff]  ;;  %v609_v23 = vld [vmem:[%s1959_s18 + $0xb8] sm:$0xff]  ;;  %v608_v24 = vld [vmem:[%s1959_s18 + $0xb0] sm:$0xff] }
  0x52   : > { %v611_v25 = vld [vmem:[%s1959_s18 + $0xc8] sm:$0xff]  ;;  %v610_v26 = vld [vmem:[%s1959_s18 + $0xc0] sm:$0xff]  ;;  %v613_v27 = vld [vmem:[%s1959_s18 + $0xd8] sm:$0xff] }
  0x53   : > { %651 = vperm.xlu1 %1707, %v591_v5   ;;  %646 = vperm.xlu0 %1706, %v590_v6   ;;  %v612_v28 = vld [vmem:[%s1959_s18 + $0xd0] sm:$0xff]  ;;  %v615_v29 = vld [vmem:[%s1959_s18 + $0xe8] sm:$0xff]  ;;  %v614_v30 = vld [vmem:[%s1959_s18 + $0xe0] sm:$0xff] }
  0x54   : > { %v617_v31 = vld [vmem:[%s1959_s18 + $0xf8] sm:$0xff]  ;;  %v616_v32 = vld [vmem:[%s1959_s18 + $0xf0] sm:$0xff]  ;;  %v619_v33 = vld [vmem:[%s1959_s18 + $0x108] sm:$0xff] }
  0x55   : > { %v618_v34 = vld [vmem:[%s1959_s18 + $0x100] sm:$0xff]  ;;  %v621_v35 = vld [vmem:[%s1959_s18 + $0x118] sm:$0xff]  ;;  %v620_v36 = vld [vmem:[%s1959_s18 + $0x110] sm:$0xff] }
  0x56   : > { %v623_v37 = vld [vmem:[%s1959_s18 + $0x128] sm:$0xff]  ;;  %v622_v38 = vld [vmem:[%s1959_s18 + $0x120] sm:$0xff] }
  0x57   : > { %661 = vperm.xlu1 %1707, %v593_v7   ;;  %656 = vperm.xlu0 %1706, %v592_v8   ;;  %v273_v1 = vld [vmem:[%s1945_s15 + $0xe8] sm:$0xff]  ;;  %v274_v2 = vld [vmem:[%s1945_s15 + $0xf0] sm:$0xff]  ;;  %v275_v3 = vld [vmem:[%s1945_s15 + $0xf8] sm:$0xff] }
  0x58   : > { %v276_v4 = vld [vmem:[%s1945_s15 + $0x100] sm:$0xff] }
  0x5b   : > { %671 = vperm.xlu1 %1707, %v595_v9   ;;  %666 = vperm.xlu0 %1706, %v594_v10   ;;  %v277_v9 = vld [vmem:[%s1945_s15 + $0x108] sm:$0xff]  ;;  %v278_v10 = vld [vmem:[%s1945_s15 + $0x110] sm:$0xff] }
  0x5f   : > { %681 = vperm.xlu1 %1707, %v597_v11   ;;  %676 = vperm.xlu0 %1706, %v596_v12   ;;  %v279_v11 = vld [vmem:[%s1945_s15 + $0x118] sm:$0xff]  ;;  %v253_v12 = vld [vmem:[%s1945_s15 + $0x48] sm:$0xff] }
  0x63   : > { %691 = vperm.xlu1 %1707, %v599_v13   ;;  %686 = vperm.xlu0 %1706, %v598_v14  }
  0x67   : > { %701 = vperm.xlu1 %1707, %v601_v15   ;;  %696 = vperm.xlu0 %1706, %v600_v16  }
  0x6b   : > { %711 = vperm.xlu1 %1707, %v603_v17   ;;  %706 = vperm.xlu0 %1706, %v602_v18   ;;  %v254_v17 = vld [vmem:[%s1945_s15 + $0x50] sm:$0xff]  ;;  %v255_v18 = vld [vmem:[%s1945_s15 + $0x58] sm:$0xff] }
  0x6f   : > { %721 = vperm.xlu1 %1707, %v605_v19   ;;  %716 = vperm.xlu0 %1706, %v604_v20   ;;  %v256_v19 = vld [vmem:[%s1945_s15 + $0x60] sm:$0xff]  ;;  %v257_v20 = vld [vmem:[%s1945_s15 + $0x68] sm:$0xff] }
  0x73   : > { %731 = vperm.xlu1 %1707, %v607_v21   ;;  %726 = vperm.xlu0 %1706, %v606_v22  }
  0x77   : > { %741 = vperm.xlu1 %1707, %v609_v23   ;;  %736 = vperm.xlu0 %1706, %v608_v24  }
  0x7b   : > { %751 = vperm.xlu1 %1707, %v611_v25   ;;  %746 = vperm.xlu0 %1706, %v610_v26  }
  0x7f   : > { %761 = vperm.xlu1 %1707, %v613_v27   ;;  %756 = vperm.xlu0 %1706, %v612_v28   ;;  %v258_v27 = vld [vmem:[%s1945_s15 + $0x70] sm:$0xff]  ;;  %v259_v28 = vld [vmem:[%s1945_s15 + $0x78] sm:$0xff] }
  0x83   : > { %771 = vperm.xlu1 %1707, %v615_v29   ;;  %766 = vperm.xlu0 %1706, %v614_v30   ;;  %v260_v29 = vld [vmem:[%s1945_s15 + $0x80] sm:$0xff]  ;;  %v261_v30 = vld [vmem:[%s1945_s15 + $0x88] sm:$0xff] }
  0x87   : > { %781 = vperm.xlu1 %1707, %v617_v31   ;;  %776 = vperm.xlu0 %1706, %v616_v32  }
  0x8b   : > { %791 = vperm.xlu1 %1707, %v619_v33   ;;  %786 = vperm.xlu0 %1706, %v618_v34  }
  0x8f   : > { %801 = vperm.xlu1 %1707, %v621_v35   ;;  %796 = vperm.xlu0 %1706, %v620_v36   ;;  %v289_v35 = vld [vmem:[%s1945_s15 + $0x168] sm:$0xff]  ;;  %v290_v36 = vld [vmem:[%s1945_s15 + $0x170] sm:$0xff] }
  0x93   : > { %811 = vperm.xlu1 %1707, %v623_v37   ;;  %806 = vperm.xlu0 %1706, %v622_v38   ;;  %v291_v37 = vld [vmem:[%s1945_s15 + $0x178] sm:$0xff]  ;;  %v292_v38 = vld [vmem:[%s1945_s15 + $0x180] sm:$0xff] }
  0xc6   : > { %v637_v55 = vpop.permute.xlu1 %636  ;;  %v627_v56 = vpop.permute.xlu0 %626 }
  0xc7   : > { %v832_v61 = vmul.f32 %v637_v55, %v262_v39  ;;  %v833_v62 = vmul.f32 %v637_v55, %v263_v40  ;;  %v834_v63 = vmul.f32 %v637_v55, %v264_v41  ;;  %v835_v0 = vmul.f32 %v637_v55, %v265_v42 }
  0xc8   : > { %v836_v5 = vmul.f32 %v637_v55, %v266_v43  ;;  %v837_v6 = vmul.f32 %v637_v55, %v267_v44  ;;  %v838_v7 = vmul.f32 %v637_v55, %v268_v45  ;;  %v839_v8 = vmul.f32 %v637_v55, %v269_v46  ;;  %v293_v43 = vld [vmem:[%s1945_s15 + $0x188] sm:$0xff]  ;;  %v294_v44 = vld [vmem:[%s1945_s15 + $0x190] sm:$0xff]  ;;  %v295_v45 = vld [vmem:[%s1945_s15 + $0x198] sm:$0xff] }
  0xc9   : > { %v840_v13 = vmul.f32 %v637_v55, %v270_v47  ;;  %1175 = vst [vmem:[%s2029_s20 + $0x90] sm:$0xff] %v832_v61  ;;  %1176 = vst [vmem:[%s2029_s20 + $0x98] sm:$0xff] %v833_v62  ;;  %v814_v14 = vmul.f32 %v627_v56, %v244_v48  ;;  %v815_v15 = vmul.f32 %v627_v56, %v245_v49  ;;  %v296_v46 = vld [vmem:[%s1945_s15 + $0x1a0] sm:$0xff]  ;;  %v283_v61 = vld [vmem:[%s1945_s15 + $0x138] sm:$0xff] }
  0xca   : > { %1177 = vst [vmem:[%s2029_s20 + $0xa0] sm:$0xff] %v834_v63  ;;  %1178 = vst [vmem:[%s2029_s20 + $0xa8] sm:$0xff] %v835_v0  ;;  %v816_v16 = vmul.f32 %v627_v56, %v246_v50  ;;  %v817_v21 = vmul.f32 %v627_v56, %v247_v51  ;;  %v818_v22 = vmul.f32 %v627_v56, %v248_v52  ;;  %v642_v25 = vpop.permute.xlu1 %641  ;;  %v632_v26 = vpop.permute.xlu0 %631  ;;  %v297_v51 = vld [vmem:[%s1945_s15 + $0x1a8] sm:$0xff]  ;;  %v280_v52 = vld [vmem:[%s1945_s15 + $0x120] sm:$0xff] }
  0xcb   : > { %1179 = vst [vmem:[%s2029_s20 + $0xb0] sm:$0xff] %v836_v5  ;;  %1180 = vst [vmem:[%s2029_s20 + $0xb8] sm:$0xff] %v837_v6  ;;  %v819_v23 = vmul.f32 %v627_v56, %v249_v53  ;;  %v820_v24 = vmul.f32 %v627_v56, %v250_v54  ;;  %v821_v31 = vmul.f32 %v627_v56, %v251_v57  ;;  %v281_v53 = vld [vmem:[%s1945_s15 + $0x128] sm:$0xff]  ;;  %v282_v54 = vld [vmem:[%s1945_s15 + $0x130] sm:$0xff] }
  0xcc   : > { %1181 = vst [vmem:[%s2029_s20 + $0xc0] sm:$0xff] %v838_v7  ;;  %1182 = vst [vmem:[%s2029_s20 + $0xc8] sm:$0xff] %v839_v8  ;;  %v822_v32 = vmul.f32 %v627_v56, %v252_v58  ;;  %v841_v33 = vmul.f32 %v642_v25, %v271_v59  ;;  %v842_v34 = vmul.f32 %v642_v25, %v272_v60  ;;  %v284_v62 = vld [vmem:[%s1945_s15 + $0x140] sm:$0xff]  ;;  %v285_v63 = vld [vmem:[%s1945_s15 + $0x148] sm:$0xff] }
  0xcd   : > { %1183 = vst.msk [vmem:[%s2029_s20 + $0xd0] sm:$0xff] %vm1164_vm0, %v840_v13  ;;  %1156 = vst [vmem:[%s2029_s20] sm:$0xff] %v814_v14  ;;  %v843_v39 = vmul.f32 %v642_v25, %v273_v1  ;;  %v844_v40 = vmul.f32 %v642_v25, %v274_v2  ;;  %v845_v41 = vmul.f32 %v642_v25, %v275_v3  ;;  %v286_v0 = vld [vmem:[%s1945_s15 + $0x150] sm:$0xff]  ;;  %v287_v5 = vld [vmem:[%s1945_s15 + $0x158] sm:$0xff] }
  0xce   : > { %1157 = vst [vmem:[%s2029_s20 + $0x8] sm:$0xff] %v815_v15  ;;  %1158 = vst [vmem:[%s2029_s20 + $0x10] sm:$0xff] %v816_v16  ;;  %v846_v42 = vmul.f32 %v642_v25, %v276_v4  ;;  %v847_v47 = vmul.f32 %v642_v25, %v277_v9  ;;  %v848_v48 = vmul.f32 %v642_v25, %v278_v10  ;;  %v652_v59 = vpop.permute.xlu1 %651  ;;  %v2077_v60 = vpop.permute.xlu0 %646  ;;  %v288_v6 = vld [vmem:[%s1945_s15 + $0x160] sm:$0xff]  ;;  %v307_v7 = vld [vmem:[%s1945_s15 + $0x1f8] sm:$0xff] }
  0xcf   : > { %1159 = vst [vmem:[%s2029_s20 + $0x18] sm:$0xff] %v817_v21  ;;  %1160 = vst [vmem:[%s2029_s20 + $0x20] sm:$0xff] %v818_v22  ;;  %v849_v49 = vmul.f32 %v642_v25, %v279_v11  ;;  %v823_v50 = vmul.f32 %v632_v26, %v253_v12  ;;  %v824_v55 = vmul.f32 %v632_v26, %v254_v17  ;;  %v308_v8 = vld [vmem:[%s1945_s15 + $0x200] sm:$0xff]  ;;  %v309_v13 = vld [vmem:[%s1945_s15 + $0x208] sm:$0xff] }
  0xd0   : > { %1161 = vst [vmem:[%s2029_s20 + $0x28] sm:$0xff] %v819_v23  ;;  %1162 = vst [vmem:[%s2029_s20 + $0x30] sm:$0xff] %v820_v24  ;;  %v825_v56 = vmul.f32 %v632_v26, %v255_v18  ;;  %v826_v57 = vmul.f32 %v632_v26, %v256_v19  ;;  %v827_v58 = vmul.f32 %v632_v26, %v257_v20  ;;  %v310_v14 = vld [vmem:[%s1945_s15 + $0x210] sm:$0xff]  ;;  %v311_v15 = vld [vmem:[%s1945_s15 + $0x218] sm:$0xff] }
  0xd1   : > { %1163 = vst [vmem:[%s2029_s20 + $0x38] sm:$0xff] %v821_v31  ;;  %1165 = vst.msk [vmem:[%s2029_s20 + $0x40] sm:$0xff] %vm1164_vm0, %v822_v32  ;;  %v828_v1 = vmul.f32 %v632_v26, %v258_v27  ;;  %v829_v2 = vmul.f32 %v632_v26, %v259_v28  ;;  %v830_v3 = vmul.f32 %v632_v26, %v260_v29  ;;  %v312_v16 = vld [vmem:[%s1945_s15 + $0x220] sm:$0xff]  ;;  %v313_v21 = vld [vmem:[%s1945_s15 + $0x228] sm:$0xff] }
  0xd2   : > { %1184 = vst [vmem:[%s2029_s20 + $0xd8] sm:$0xff] %v841_v33  ;;  %1185 = vst [vmem:[%s2029_s20 + $0xe0] sm:$0xff] %v842_v34  ;;  %v831_v4 = vmul.f32 %v632_v26, %v261_v30  ;;  %v859_v9 = vmul.f32 %v652_v59, %v289_v35  ;;  %v860_v10 = vmul.f32 %v652_v59, %v290_v36  ;;  %v314_v22 = vld [vmem:[%s1945_s15 + $0x230] sm:$0xff]  ;;  %v315_v23 = vld [vmem:[%s1945_s15 + $0x238] sm:$0xff]  ;;  %v662_v29 = vpop.permute.xlu1 %661  ;;  %v2116_v30 = vpop.permute.xlu0 %656 }
  0xd3   : > { %1186 = vst [vmem:[%s2029_s20 + $0xe8] sm:$0xff] %v843_v39  ;;  %1187 = vst [vmem:[%s2029_s20 + $0xf0] sm:$0xff] %v844_v40  ;;  %v861_v11 = vmul.f32 %v652_v59, %v291_v37  ;;  %v862_v12 = vmul.f32 %v652_v59, %v292_v38  ;;  %v863_v17 = vmul.f32 %v652_v59, %v293_v43  ;;  %v298_v24 = vld [vmem:[%s1945_s15 + $0x1b0] sm:$0xff]  ;;  %v299_v31 = vld [vmem:[%s1945_s15 + $0x1b8] sm:$0xff] }
  0xd4   : > { %1188 = vst [vmem:[%s2029_s20 + $0xf8] sm:$0xff] %v845_v41  ;;  %1189 = vst [vmem:[%s2029_s20 + $0x100] sm:$0xff] %v846_v42  ;;  %v864_v18 = vmul.f32 %v652_v59, %v294_v44  ;;  %v865_v19 = vmul.f32 %v652_v59, %v295_v45  ;;  %v866_v20 = vmul.f32 %v652_v59, %v296_v46  ;;  %v300_v32 = vld [vmem:[%s1945_s15 + $0x1c0] sm:$0xff]  ;;  %v301_v33 = vld [vmem:[%s1945_s15 + $0x1c8] sm:$0xff] }
  0xd5   : > { %1190 = vst [vmem:[%s2029_s20 + $0x108] sm:$0xff] %v847_v47  ;;  %1191 = vst [vmem:[%s2029_s20 + $0x110] sm:$0xff] %v848_v48  ;;  %v867_v25 = vmul.f32 %v652_v59, %v297_v51  ;;  %v850_v26 = vmul.f32 %v2077_v60, %v280_v52  ;;  %v851_v27 = vmul.f32 %v2077_v60, %v281_v53  ;;  %v302_v34 = vld [vmem:[%s1945_s15 + $0x1d0] sm:$0xff]  ;;  %v303_v39 = vld [vmem:[%s1945_s15 + $0x1d8] sm:$0xff] }
  0xd6   : > { %1192 = vst.msk [vmem:[%s2029_s20 + $0x118] sm:$0xff] %vm1164_vm0, %v849_v49  ;;  %1166 = vst [vmem:[%s2029_s20 + $0x48] sm:$0xff] %v823_v50  ;;  %v852_v28 = vmul.f32 %v2077_v60, %v282_v54  ;;  %v853_v35 = vmul.f32 %v2077_v60, %v283_v61  ;;  %v854_v36 = vmul.f32 %v2077_v60, %v284_v62  ;;  %v304_v40 = vld [vmem:[%s1945_s15 + $0x1e0] sm:$0xff]  ;;  %v305_v41 = vld [vmem:[%s1945_s15 + $0x1e8] sm:$0xff] }
  0xd7   : > { %1167 = vst [vmem:[%s2029_s20 + $0x50] sm:$0xff] %v824_v55  ;;  %1168 = vst [vmem:[%s2029_s20 + $0x58] sm:$0xff] %v825_v56  ;;  %v855_v37 = vmul.f32 %v2077_v60, %v285_v63  ;;  %v856_v38 = vmul.f32 %v2077_v60, %v286_v0  ;;  %v306_v42 = vld [vmem:[%s1945_s15 + $0x1f0] sm:$0xff]  ;;  %v857_v43 = vmul.f32 %v2077_v60, %v287_v5  ;;  %v325_v47 = vld [vmem:[%s1945_s15 + $0x288] sm:$0xff]  ;;  %v672_v63 = vpop.permute.xlu1 %671 }
  0xd8   : > { %1169 = vst [vmem:[%s2029_s20 + $0x60] sm:$0xff] %v826_v57  ;;  %1170 = vst [vmem:[%s2029_s20 + $0x68] sm:$0xff] %v827_v58  ;;  %v858_v44 = vmul.f32 %v2077_v60, %v288_v6  ;;  %v877_v45 = vmul.f32 %v662_v29, %v307_v7  ;;  %v878_v46 = vmul.f32 %v662_v29, %v308_v8  ;;  %v326_v48 = vld [vmem:[%s1945_s15 + $0x290] sm:$0xff]  ;;  %v327_v49 = vld [vmem:[%s1945_s15 + $0x298] sm:$0xff] }
  0xd9   : > { %1171 = vst [vmem:[%s2029_s20 + $0x70] sm:$0xff] %v828_v1  ;;  %1172 = vst [vmem:[%s2029_s20 + $0x78] sm:$0xff] %v829_v2  ;;  %v328_v50 = vld [vmem:[%s1945_s15 + $0x2a0] sm:$0xff]  ;;  %v879_v51 = vmul.f32 %v662_v29, %v309_v13  ;;  %v880_v52 = vmul.f32 %v662_v29, %v310_v14  ;;  %v881_v53 = vmul.f32 %v662_v29, %v311_v15  ;;  %v329_v55 = vld [vmem:[%s1945_s15 + $0x2a8] sm:$0xff]  ;;  %v2160_v1 = vpop.permute.xlu0 %666 }
  0xda   : > { %1173 = vst [vmem:[%s2029_s20 + $0x80] sm:$0xff] %v830_v3  ;;  %1174 = vst.msk [vmem:[%s2029_s20 + $0x88] sm:$0xff] %vm1164_vm0, %v831_v4  ;;  %v882_v54 = vmul.f32 %v662_v29, %v312_v16  ;;  %v330_v56 = vld [vmem:[%s1945_s15 + $0x2b0] sm:$0xff]  ;;  %v331_v57 = vld [vmem:[%s1945_s15 + $0x2b8] sm:$0xff]  ;;  %v883_v59 = vmul.f32 %v662_v29, %v313_v21  ;;  %v884_v60 = vmul.f32 %v662_v29, %v314_v22 }
  0xdb   : > { %1202 = vst [vmem:[%s2029_s20 + $0x168] sm:$0xff] %v859_v9  ;;  %1203 = vst [vmem:[%s2029_s20 + $0x170] sm:$0xff] %v860_v10  ;;  %v332_v58 = vld [vmem:[%s1945_s15 + $0x2c0] sm:$0xff]  ;;  %v885_v61 = vmul.f32 %v662_v29, %v315_v23  ;;  %v868_v62 = vmul.f32 %v2116_v30, %v298_v24  ;;  %v333_v0 = vld [vmem:[%s1945_s15 + $0x2c8] sm:$0xff]  ;;  %v869_v5 = vmul.f32 %v2116_v30, %v299_v31 }
  0xdc   : > { %1204 = vst [vmem:[%s2029_s20 + $0x178] sm:$0xff] %v861_v11  ;;  %1205 = vst [vmem:[%s2029_s20 + $0x180] sm:$0xff] %v862_v12  ;;  %v316_v2 = vld [vmem:[%s1945_s15 + $0x240] sm:$0xff]  ;;  %v317_v3 = vld [vmem:[%s1945_s15 + $0x248] sm:$0xff]  ;;  %v870_v6 = vmul.f32 %v2116_v30, %v300_v32  ;;  %v871_v7 = vmul.f32 %v2116_v30, %v301_v33  ;;  %v872_v8 = vmul.f32 %v2116_v30, %v302_v34  ;;  %v682_v33 = vpop.permute.xlu1 %681 }
  0xdd   : > { %1206 = vst [vmem:[%s2029_s20 + $0x188] sm:$0xff] %v863_v17  ;;  %1207 = vst [vmem:[%s2029_s20 + $0x190] sm:$0xff] %v864_v18  ;;  %v318_v4 = vld [vmem:[%s1945_s15 + $0x250] sm:$0xff]  ;;  %v319_v9 = vld [vmem:[%s1945_s15 + $0x258] sm:$0xff]  ;;  %v873_v13 = vmul.f32 %v2116_v30, %v303_v39  ;;  %v874_v14 = vmul.f32 %v2116_v30, %v304_v40  ;;  %v875_v15 = vmul.f32 %v2116_v30, %v305_v41 }
  0xde   : > { %1208 = vst [vmem:[%s2029_s20 + $0x198] sm:$0xff] %v865_v19  ;;  %1209 = vst [vmem:[%s2029_s20 + $0x1a0] sm:$0xff] %v866_v20  ;;  %v320_v10 = vld [vmem:[%s1945_s15 + $0x260] sm:$0xff]  ;;  %v321_v11 = vld [vmem:[%s1945_s15 + $0x268] sm:$0xff]  ;;  %v876_v16 = vmul.f32 %v2116_v30, %v306_v42  ;;  %v895_v21 = vmul.f32 %v672_v63, %v325_v47  ;;  %v896_v22 = vmul.f32 %v672_v63, %v326_v48 }
  0xdf   : > { %1210 = vst.msk [vmem:[%s2029_s20 + $0x1a8] sm:$0xff] %vm1164_vm0, %v867_v25  ;;  %1193 = vst [vmem:[%s2029_s20 + $0x120] sm:$0xff] %v850_v26  ;;  %v322_v12 = vld [vmem:[%s1945_s15 + $0x270] sm:$0xff]  ;;  %v323_v17 = vld [vmem:[%s1945_s15 + $0x278] sm:$0xff]  ;;  %v897_v23 = vmul.f32 %v672_v63, %v327_v49  ;;  %v898_v24 = vmul.f32 %v672_v63, %v328_v50  ;;  %v899_v29 = vmul.f32 %v672_v63, %v329_v55 }
  0xe0   : > { %1194 = vst [vmem:[%s2029_s20 + $0x128] sm:$0xff] %v851_v27  ;;  %1195 = vst [vmem:[%s2029_s20 + $0x130] sm:$0xff] %v852_v28  ;;  %v324_v18 = vld [vmem:[%s1945_s15 + $0x280] sm:$0xff]  ;;  %v343_v19 = vld [vmem:[%s1945_s15 + $0x318] sm:$0xff]  ;;  %v900_v30 = vmul.f32 %v672_v63, %v330_v56  ;;  %v901_v31 = vmul.f32 %v672_v63, %v331_v57  ;;  %v902_v32 = vmul.f32 %v672_v63, %v332_v58 }
  0xe1   : > { %1196 = vst [vmem:[%s2029_s20 + $0x138] sm:$0xff] %v853_v35  ;;  %1197 = vst [vmem:[%s2029_s20 + $0x140] sm:$0xff] %v854_v36  ;;  %v344_v20 = vld [vmem:[%s1945_s15 + $0x320] sm:$0xff]  ;;  %v345_v25 = vld [vmem:[%s1945_s15 + $0x328] sm:$0xff]  ;;  %v903_v39 = vmul.f32 %v672_v63, %v333_v0  ;;  %v886_v40 = vmul.f32 %v2160_v1, %v316_v2  ;;  %v887_v41 = vmul.f32 %v2160_v1, %v317_v3  ;;  %v2247_v3 = vpop.permute.xlu1 %691 }
  0xe2   : > { %1198 = vst [vmem:[%s2029_s20 + $0x148] sm:$0xff] %v855_v37  ;;  %1199 = vst [vmem:[%s2029_s20 + $0x150] sm:$0xff] %v856_v38  ;;  %v346_v26 = vld [vmem:[%s1945_s15 + $0x330] sm:$0xff]  ;;  %v347_v27 = vld [vmem:[%s1945_s15 + $0x338] sm:$0xff]  ;;  %v2206_v37 = vpop.permute.xlu0 %676  ;;  %v888_v42 = vmul.f32 %v2160_v1, %v318_v4  ;;  %v889_v47 = vmul.f32 %v2160_v1, %v319_v9  ;;  %v890_v48 = vmul.f32 %v2160_v1, %v320_v10 }
  0xe3   : > { %1200 = vst [vmem:[%s2029_s20 + $0x158] sm:$0xff] %v857_v43  ;;  %1201 = vst.msk [vmem:[%s2029_s20 + $0x160] sm:$0xff] %vm1164_vm0, %v858_v44  ;;  %v348_v28 = vld [vmem:[%s1945_s15 + $0x340] sm:$0xff]  ;;  %v349_v34 = vld [vmem:[%s1945_s15 + $0x348] sm:$0xff]  ;;  %v891_v49 = vmul.f32 %v2160_v1, %v321_v11  ;;  %v892_v50 = vmul.f32 %v2160_v1, %v322_v12  ;;  %v893_v55 = vmul.f32 %v2160_v1, %v323_v17 }
  0xe4   : > { %1220 = vst [vmem:[%s2029_s20 + $0x1f8] sm:$0xff] %v877_v45  ;;  %1221 = vst [vmem:[%s2029_s20 + $0x200] sm:$0xff] %v878_v46  ;;  %v350_v35 = vld [vmem:[%s1945_s15 + $0x350] sm:$0xff]  ;;  %v351_v36 = vld [vmem:[%s1945_s15 + $0x358] sm:$0xff]  ;;  %v894_v56 = vmul.f32 %v2160_v1, %v324_v18  ;;  %v913_v57 = vmul.f32 %v682_v33, %v343_v19  ;;  %v914_v58 = vmul.f32 %v682_v33, %v344_v20 }
  0xe5   : > { %1222 = vst [vmem:[%s2029_s20 + $0x208] sm:$0xff] %v879_v51  ;;  %1223 = vst [vmem:[%s2029_s20 + $0x210] sm:$0xff] %v880_v52  ;;  %v334_v38 = vld [vmem:[%s1945_s15 + $0x2d0] sm:$0xff]  ;;  %v335_v43 = vld [vmem:[%s1945_s15 + $0x2d8] sm:$0xff]  ;;  %v915_v63 = vmul.f32 %v682_v33, %v345_v25  ;;  %v916_v0 = vmul.f32 %v682_v33, %v346_v26  ;;  %v917_v1 = vmul.f32 %v682_v33, %v347_v27 }
  0xe6   : > { %1224 = vst [vmem:[%s2029_s20 + $0x218] sm:$0xff] %v881_v53  ;;  %1225 = vst [vmem:[%s2029_s20 + $0x220] sm:$0xff] %v882_v54  ;;  %v336_v44 = vld [vmem:[%s1945_s15 + $0x2e0] sm:$0xff]  ;;  %v337_v45 = vld [vmem:[%s1945_s15 + $0x2e8] sm:$0xff]  ;;  %v918_v2 = vmul.f32 %v682_v33, %v348_v28  ;;  %v919_v9 = vmul.f32 %v682_v33, %v349_v34  ;;  %v920_v10 = vmul.f32 %v682_v33, %v350_v35 }
  0xe7   : > { %1226 = vst [vmem:[%s2029_s20 + $0x228] sm:$0xff] %v883_v59  ;;  %1227 = vst [vmem:[%s2029_s20 + $0x230] sm:$0xff] %v884_v60  ;;  %v338_v46 = vld [vmem:[%s1945_s15 + $0x2f0] sm:$0xff]  ;;  %v339_v51 = vld [vmem:[%s1945_s15 + $0x2f8] sm:$0xff]  ;;  %v921_v11 = vmul.f32 %v682_v33, %v351_v36  ;;  %v904_v12 = vmul.f32 %v2206_v37, %v334_v38  ;;  %v905_v17 = vmul.f32 %v2206_v37, %v335_v43 }
  0xe8   : > { %1228 = vst.msk [vmem:[%s2029_s20 + $0x238] sm:$0xff] %vm1164_vm0, %v885_v61  ;;  %1211 = vst [vmem:[%s2029_s20 + $0x1b0] sm:$0xff] %v868_v62  ;;  %v340_v52 = vld [vmem:[%s1945_s15 + $0x300] sm:$0xff]  ;;  %v341_v53 = vld [vmem:[%s1945_s15 + $0x308] sm:$0xff]  ;;  %v906_v18 = vmul.f32 %v2206_v37, %v336_v44  ;;  %v907_v19 = vmul.f32 %v2206_v37, %v337_v45  ;;  %v908_v20 = vmul.f32 %v2206_v37, %v338_v46 }
  0xe9   : > { %1212 = vst [vmem:[%s2029_s20 + $0x1b8] sm:$0xff] %v869_v5  ;;  %1213 = vst [vmem:[%s2029_s20 + $0x1c0] sm:$0xff] %v870_v6  ;;  %v342_v54 = vld [vmem:[%s1945_s15 + $0x310] sm:$0xff]  ;;  %v361_v59 = vld [vmem:[%s1945_s15 + $0x3a8] sm:$0xff]  ;;  %v909_v25 = vmul.f32 %v2206_v37, %v339_v51  ;;  %v910_v26 = vmul.f32 %v2206_v37, %v340_v52  ;;  %v911_v27 = vmul.f32 %v2206_v37, %v341_v53 }
  0xea   : > { %1214 = vst [vmem:[%s2029_s20 + $0x1c8] sm:$0xff] %v871_v7  ;;  %1215 = vst [vmem:[%s2029_s20 + $0x1d0] sm:$0xff] %v872_v8  ;;  %v362_v60 = vld [vmem:[%s1945_s15 + $0x3b0] sm:$0xff]  ;;  %v363_v61 = vld [vmem:[%s1945_s15 + $0x3b8] sm:$0xff]  ;;  %v2253_v8 = vpop.permute.xlu0 %686  ;;  %v912_v28 = vmul.f32 %v2206_v37, %v342_v54  ;;  %v931_v33 = vmul.f32 %v2247_v3, %v361_v59  ;;  %v2298_v37 = vpop.permute.xlu1 %701 }
  0xeb   : > { %1216 = vst [vmem:[%s2029_s20 + $0x1d8] sm:$0xff] %v873_v13  ;;  %1217 = vst [vmem:[%s2029_s20 + $0x1e0] sm:$0xff] %v874_v14  ;;  %v364_v62 = vld [vmem:[%s1945_s15 + $0x3c0] sm:$0xff]  ;;  %v365_v4 = vld [vmem:[%s1945_s15 + $0x3c8] sm:$0xff]  ;;  %v932_v34 = vmul.f32 %v2247_v3, %v362_v60  ;;  %v933_v35 = vmul.f32 %v2247_v3, %v363_v61 }
  0xec   : > { %1218 = vst [vmem:[%s2029_s20 + $0x1e8] sm:$0xff] %v875_v15  ;;  %1219 = vst.msk [vmem:[%s2029_s20 + $0x1f0] sm:$0xff] %vm1164_vm0, %v876_v16  ;;  %v366_v5 = vld [vmem:[%s1945_s15 + $0x3d0] sm:$0xff]  ;;  %v367_v6 = vld [vmem:[%s1945_s15 + $0x3d8] sm:$0xff]  ;;  %v934_v36 = vmul.f32 %v2247_v3, %v364_v62  ;;  %v935_v43 = vmul.f32 %v2247_v3, %v365_v4 }
  0xed   : > { %1238 = vst [vmem:[%s2029_s20 + $0x288] sm:$0xff] %v895_v21  ;;  %1239 = vst [vmem:[%s2029_s20 + $0x290] sm:$0xff] %v896_v22  ;;  %v368_v7 = vld [vmem:[%s1945_s15 + $0x3e0] sm:$0xff]  ;;  %v369_v13 = vld [vmem:[%s1945_s15 + $0x3e8] sm:$0xff]  ;;  %v936_v44 = vmul.f32 %v2247_v3, %v366_v5  ;;  %v937_v45 = vmul.f32 %v2247_v3, %v367_v6 }
  0xee   : > { %1240 = vst [vmem:[%s2029_s20 + $0x298] sm:$0xff] %v897_v23  ;;  %1241 = vst [vmem:[%s2029_s20 + $0x2a0] sm:$0xff] %v898_v24  ;;  %v352_v14 = vld [vmem:[%s1945_s15 + $0x360] sm:$0xff]  ;;  %v353_v15 = vld [vmem:[%s1945_s15 + $0x368] sm:$0xff]  ;;  %v938_v46 = vmul.f32 %v2247_v3, %v368_v7  ;;  %v939_v51 = vmul.f32 %v2247_v3, %v369_v13  ;;  %v2352_v7 = vpop.permute.xlu1 %711 }
  0xef   : > { %1242 = vst [vmem:[%s2029_s20 + $0x2a8] sm:$0xff] %v899_v29  ;;  %1243 = vst [vmem:[%s2029_s20 + $0x2b0] sm:$0xff] %v900_v30  ;;  %v354_v16 = vld [vmem:[%s1945_s15 + $0x370] sm:$0xff]  ;;  %v355_v21 = vld [vmem:[%s1945_s15 + $0x378] sm:$0xff]  ;;  %v922_v52 = vmul.f32 %v2253_v8, %v352_v14  ;;  %v923_v53 = vmul.f32 %v2253_v8, %v353_v15 }
  0xf0   : > { %1244 = vst [vmem:[%s2029_s20 + $0x2b8] sm:$0xff] %v901_v31  ;;  %1245 = vst [vmem:[%s2029_s20 + $0x2c0] sm:$0xff] %v902_v32  ;;  %v356_v22 = vld [vmem:[%s1945_s15 + $0x380] sm:$0xff]  ;;  %v357_v23 = vld [vmem:[%s1945_s15 + $0x388] sm:$0xff]  ;;  %v924_v54 = vmul.f32 %v2253_v8, %v354_v16  ;;  %v925_v59 = vmul.f32 %v2253_v8, %v355_v21 }
  0xf1   : > { %1246 = vst.msk [vmem:[%s2029_s20 + $0x2c8] sm:$0xff] %vm1164_vm0, %v903_v39  ;;  %1229 = vst [vmem:[%s2029_s20 + $0x240] sm:$0xff] %v886_v40  ;;  %v358_v24 = vld [vmem:[%s1945_s15 + $0x390] sm:$0xff]  ;;  %v359_v29 = vld [vmem:[%s1945_s15 + $0x398] sm:$0xff]  ;;  %v926_v60 = vmul.f32 %v2253_v8, %v356_v22  ;;  %v927_v61 = vmul.f32 %v2253_v8, %v357_v23 }
  0xf2   : > { %1230 = vst [vmem:[%s2029_s20 + $0x248] sm:$0xff] %v887_v41  ;;  %1231 = vst [vmem:[%s2029_s20 + $0x250] sm:$0xff] %v888_v42  ;;  %v360_v30 = vld [vmem:[%s1945_s15 + $0x3a0] sm:$0xff]  ;;  %v379_v31 = vld [vmem:[%s1945_s15 + $0x438] sm:$0xff]  ;;  %v2304_v42 = vpop.permute.xlu0 %696  ;;  %v928_v62 = vmul.f32 %v2253_v8, %v358_v24  ;;  %v929_v3 = vmul.f32 %v2253_v8, %v359_v29 }
  0xf3   : > { %1232 = vst [vmem:[%s2029_s20 + $0x258] sm:$0xff] %v889_v47  ;;  %1233 = vst [vmem:[%s2029_s20 + $0x260] sm:$0xff] %v890_v48  ;;  %v380_v32 = vld [vmem:[%s1945_s15 + $0x440] sm:$0xff]  ;;  %v381_v38 = vld [vmem:[%s1945_s15 + $0x448] sm:$0xff]  ;;  %v930_v4 = vmul.f32 %v2253_v8, %v360_v30  ;;  %v949_v5 = vmul.f32 %v2298_v37, %v379_v31 }
  0xf4   : > { %1234 = vst [vmem:[%s2029_s20 + $0x268] sm:$0xff] %v891_v49  ;;  %1235 = vst [vmem:[%s2029_s20 + $0x270] sm:$0xff] %v892_v50  ;;  %v382_v39 = vld [vmem:[%s1945_s15 + $0x450] sm:$0xff]  ;;  %v383_v40 = vld [vmem:[%s1945_s15 + $0x458] sm:$0xff]  ;;  %v950_v6 = vmul.f32 %v2298_v37, %v380_v32  ;;  %v951_v13 = vmul.f32 %v2298_v37, %v381_v38 }
  0xf5   : > { %1236 = vst [vmem:[%s2029_s20 + $0x278] sm:$0xff] %v893_v55  ;;  %1237 = vst.msk [vmem:[%s2029_s20 + $0x280] sm:$0xff] %vm1164_vm0, %v894_v56  ;;  %v384_v41 = vld [vmem:[%s1945_s15 + $0x460] sm:$0xff]  ;;  %v385_v47 = vld [vmem:[%s1945_s15 + $0x468] sm:$0xff]  ;;  %v952_v14 = vmul.f32 %v2298_v37, %v382_v39  ;;  %v953_v15 = vmul.f32 %v2298_v37, %v383_v40 }
  0xf6   : > { %1256 = vst [vmem:[%s2029_s20 + $0x318] sm:$0xff] %v913_v57  ;;  %1257 = vst [vmem:[%s2029_s20 + $0x320] sm:$0xff] %v914_v58  ;;  %v386_v48 = vld [vmem:[%s1945_s15 + $0x470] sm:$0xff]  ;;  %v387_v49 = vld [vmem:[%s1945_s15 + $0x478] sm:$0xff]  ;;  %v2358_v8 = vpop.permute.xlu0 %706  ;;  %v954_v16 = vmul.f32 %v2298_v37, %v384_v41  ;;  %v955_v21 = vmul.f32 %v2298_v37, %v385_v47 }
  0xf7   : > { %1258 = vst [vmem:[%s2029_s20 + $0x328] sm:$0xff] %v915_v63  ;;  %1259 = vst [vmem:[%s2029_s20 + $0x330] sm:$0xff] %v916_v0  ;;  %v370_v50 = vld [vmem:[%s1945_s15 + $0x3f0] sm:$0xff]  ;;  %v371_v55 = vld [vmem:[%s1945_s15 + $0x3f8] sm:$0xff]  ;;  %v956_v22 = vmul.f32 %v2298_v37, %v386_v48  ;;  %v957_v23 = vmul.f32 %v2298_v37, %v387_v49 }
  0xf8   : > { %1260 = vst [vmem:[%s2029_s20 + $0x338] sm:$0xff] %v917_v1  ;;  %1261 = vst [vmem:[%s2029_s20 + $0x340] sm:$0xff] %v918_v2  ;;  %v372_v56 = vld [vmem:[%s1945_s15 + $0x400] sm:$0xff]  ;;  %v373_v57 = vld [vmem:[%s1945_s15 + $0x408] sm:$0xff]  ;;  %v940_v24 = vmul.f32 %v2304_v42, %v370_v50  ;;  %v941_v29 = vmul.f32 %v2304_v42, %v371_v55 }
  0xf9   : > { %1262 = vst [vmem:[%s2029_s20 + $0x348] sm:$0xff] %v919_v9  ;;  %1263 = vst [vmem:[%s2029_s20 + $0x350] sm:$0xff] %v920_v10  ;;  %v374_v58 = vld [vmem:[%s1945_s15 + $0x410] sm:$0xff]  ;;  %v375_v63 = vld [vmem:[%s1945_s15 + $0x418] sm:$0xff]  ;;  %v942_v30 = vmul.f32 %v2304_v42, %v372_v56  ;;  %v943_v31 = vmul.f32 %v2304_v42, %v373_v57 }
  0xfa   : > { %1264 = vst.msk [vmem:[%s2029_s20 + $0x358] sm:$0xff] %vm1164_vm0, %v921_v11  ;;  %1247 = vst [vmem:[%s2029_s20 + $0x2d0] sm:$0xff] %v904_v12  ;;  %v376_v0 = vld [vmem:[%s1945_s15 + $0x420] sm:$0xff]  ;;  %v377_v1 = vld [vmem:[%s1945_s15 + $0x428] sm:$0xff]  ;;  %v944_v32 = vmul.f32 %v2304_v42, %v374_v58  ;;  %v945_v37 = vmul.f32 %v2304_v42, %v375_v63  ;;  %v2412_v47 = vpop.permute.xlu0 %716 }
  0xfb   : > { %1248 = vst [vmem:[%s2029_s20 + $0x2d8] sm:$0xff] %v905_v17  ;;  %1249 = vst [vmem:[%s2029_s20 + $0x2e0] sm:$0xff] %v906_v18  ;;  %v378_v2 = vld [vmem:[%s1945_s15 + $0x430] sm:$0xff]  ;;  %v397_v9 = vld [vmem:[%s1945_s15 + $0x4c8] sm:$0xff]  ;;  %v946_v38 = vmul.f32 %v2304_v42, %v376_v0  ;;  %v947_v39 = vmul.f32 %v2304_v42, %v377_v1 }
  0xfc   : > { %1250 = vst [vmem:[%s2029_s20 + $0x2e8] sm:$0xff] %v907_v19  ;;  %1251 = vst [vmem:[%s2029_s20 + $0x2f0] sm:$0xff] %v908_v20  ;;  %v398_v10 = vld [vmem:[%s1945_s15 + $0x4d0] sm:$0xff]  ;;  %v399_v11 = vld [vmem:[%s1945_s15 + $0x4d8] sm:$0xff]  ;;  %v948_v40 = vmul.f32 %v2304_v42, %v378_v2  ;;  %v967_v42 = vmul.f32 %v2352_v7, %v397_v9 }
  0xfd   : > { %1252 = vst [vmem:[%s2029_s20 + $0x2f8] sm:$0xff] %v909_v25  ;;  %1253 = vst [vmem:[%s2029_s20 + $0x300] sm:$0xff] %v910_v26  ;;  %v400_v12 = vld [vmem:[%s1945_s15 + $0x4e0] sm:$0xff]  ;;  %v401_v17 = vld [vmem:[%s1945_s15 + $0x4e8] sm:$0xff]  ;;  %v968_v48 = vmul.f32 %v2352_v7, %v398_v10  ;;  %v969_v49 = vmul.f32 %v2352_v7, %v399_v11 }
  0xfe   : > { %1254 = vst [vmem:[%s2029_s20 + $0x308] sm:$0xff] %v911_v27  ;;  %1255 = vst.msk [vmem:[%s2029_s20 + $0x310] sm:$0xff] %vm1164_vm0, %v912_v28  ;;  %v402_v18 = vld [vmem:[%s1945_s15 + $0x4f0] sm:$0xff]  ;;  %v403_v19 = vld [vmem:[%s1945_s15 + $0x4f8] sm:$0xff]  ;;  %v970_v50 = vmul.f32 %v2352_v7, %v400_v12  ;;  %v971_v55 = vmul.f32 %v2352_v7, %v401_v17  ;;  %v2465_v17 = vpop.permute.xlu0 %726 }
  0xff   : > { %1274 = vst [vmem:[%s2029_s20 + $0x3a8] sm:$0xff] %v931_v33  ;;  %1275 = vst [vmem:[%s2029_s20 + $0x3b0] sm:$0xff] %v932_v34  ;;  %v404_v20 = vld [vmem:[%s1945_s15 + $0x500] sm:$0xff]  ;;  %v405_v25 = vld [vmem:[%s1945_s15 + $0x508] sm:$0xff]  ;;  %v972_v56 = vmul.f32 %v2352_v7, %v402_v18  ;;  %v973_v57 = vmul.f32 %v2352_v7, %v403_v19 }
 0x100   : > { %1276 = vst [vmem:[%s2029_s20 + $0x3b8] sm:$0xff] %v933_v35  ;;  %1277 = vst [vmem:[%s2029_s20 + $0x3c0] sm:$0xff] %v934_v36  ;;  %v388_v26 = vld [vmem:[%s1945_s15 + $0x480] sm:$0xff]  ;;  %v389_v27 = vld [vmem:[%s1945_s15 + $0x488] sm:$0xff]  ;;  %v974_v58 = vmul.f32 %v2352_v7, %v404_v20  ;;  %v975_v63 = vmul.f32 %v2352_v7, %v405_v25 }
 0x101   : > { %1278 = vst [vmem:[%s2029_s20 + $0x3c8] sm:$0xff] %v935_v43  ;;  %1279 = vst [vmem:[%s2029_s20 + $0x3d0] sm:$0xff] %v936_v44  ;;  %v390_v28 = vld [vmem:[%s1945_s15 + $0x490] sm:$0xff]  ;;  %v391_v33 = vld [vmem:[%s1945_s15 + $0x498] sm:$0xff]  ;;  %v2408_v44 = vpop.permute.xlu1 %721  ;;  %v958_v0 = vmul.f32 %v2358_v8, %v388_v26  ;;  %v959_v1 = vmul.f32 %v2358_v8, %v389_v27 }
 0x102   : > { %1280 = vst [vmem:[%s2029_s20 + $0x3d8] sm:$0xff] %v937_v45  ;;  %1281 = vst [vmem:[%s2029_s20 + $0x3e0] sm:$0xff] %v938_v46  ;;  %v392_v34 = vld [vmem:[%s1945_s15 + $0x4a0] sm:$0xff]  ;;  %v393_v35 = vld [vmem:[%s1945_s15 + $0x4a8] sm:$0xff]  ;;  %v960_v2 = vmul.f32 %v2358_v8, %v390_v28  ;;  %v961_v7 = vmul.f32 %v2358_v8, %v391_v33 }
 0x103   : > { %1282 = vst.msk [vmem:[%s2029_s20 + $0x3e8] sm:$0xff] %vm1164_vm0, %v939_v51  ;;  %1265 = vst [vmem:[%s2029_s20 + $0x360] sm:$0xff] %v922_v52  ;;  %v394_v36 = vld [vmem:[%s1945_s15 + $0x4b0] sm:$0xff]  ;;  %v395_v41 = vld [vmem:[%s1945_s15 + $0x4b8] sm:$0xff]  ;;  %v962_v9 = vmul.f32 %v2358_v8, %v392_v34  ;;  %v963_v10 = vmul.f32 %v2358_v8, %v393_v35 }
 0x104   : > { %1266 = vst [vmem:[%s2029_s20 + $0x368] sm:$0xff] %v923_v53  ;;  %1267 = vst [vmem:[%s2029_s20 + $0x370] sm:$0xff] %v924_v54  ;;  %v396_v43 = vld [vmem:[%s1945_s15 + $0x4c0] sm:$0xff]  ;;  %v415_v45 = vld [vmem:[%s1945_s15 + $0x558] sm:$0xff]  ;;  %v964_v11 = vmul.f32 %v2358_v8, %v394_v36  ;;  %v965_v18 = vmul.f32 %v2358_v8, %v395_v41 }
 0x105   : > { %1268 = vst [vmem:[%s2029_s20 + $0x378] sm:$0xff] %v925_v59  ;;  %1269 = vst [vmem:[%s2029_s20 + $0x380] sm:$0xff] %v926_v60  ;;  %v416_v46 = vld [vmem:[%s1945_s15 + $0x560] sm:$0xff]  ;;  %v417_v51 = vld [vmem:[%s1945_s15 + $0x568] sm:$0xff]  ;;  %v966_v19 = vmul.f32 %v2358_v8, %v396_v43  ;;  %v985_v20 = vmul.f32 %v2408_v44, %v415_v45 }
 0x106   : > { %1270 = vst [vmem:[%s2029_s20 + $0x388] sm:$0xff] %v927_v61  ;;  %1271 = vst [vmem:[%s2029_s20 + $0x390] sm:$0xff] %v928_v62  ;;  %v418_v52 = vld [vmem:[%s1945_s15 + $0x570] sm:$0xff]  ;;  %v419_v53 = vld [vmem:[%s1945_s15 + $0x578] sm:$0xff]  ;;  %v987_v8 = vmul.f32 %v2408_v44, %v417_v51  ;;  %v2519_v51 = vpop.permute.xlu0 %736 }
 0x107   : > { %1272 = vst [vmem:[%s2029_s20 + $0x398] sm:$0xff] %v929_v3  ;;  %1273 = vst.msk [vmem:[%s2029_s20 + $0x3a0] sm:$0xff] %vm1164_vm0, %v930_v4  ;;  %v420_v54 = vld [vmem:[%s1945_s15 + $0x580] sm:$0xff]  ;;  %v421_v59 = vld [vmem:[%s1945_s15 + $0x588] sm:$0xff]  ;;  %v988_v26 = vmul.f32 %v2408_v44, %v418_v52  ;;  %v989_v27 = vmul.f32 %v2408_v44, %v419_v53 }
 0x108   : > { %1292 = vst [vmem:[%s2029_s20 + $0x438] sm:$0xff] %v949_v5  ;;  %1293 = vst [vmem:[%s2029_s20 + $0x440] sm:$0xff] %v950_v6  ;;  %v422_v60 = vld [vmem:[%s1945_s15 + $0x590] sm:$0xff]  ;;  %v423_v61 = vld [vmem:[%s1945_s15 + $0x598] sm:$0xff]  ;;  %v990_v28 = vmul.f32 %v2408_v44, %v420_v54  ;;  %v991_v33 = vmul.f32 %v2408_v44, %v421_v59 }
 0x109   : > { %1294 = vst [vmem:[%s2029_s20 + $0x448] sm:$0xff] %v951_v13  ;;  %1295 = vst [vmem:[%s2029_s20 + $0x450] sm:$0xff] %v952_v14  ;;  %v406_v62 = vld [vmem:[%s1945_s15 + $0x510] sm:$0xff]  ;;  %v407_v3 = vld [vmem:[%s1945_s15 + $0x518] sm:$0xff]  ;;  %v992_v34 = vmul.f32 %v2408_v44, %v422_v60  ;;  %v993_v35 = vmul.f32 %v2408_v44, %v423_v61 }
 0x10a   : > { %1296 = vst [vmem:[%s2029_s20 + $0x458] sm:$0xff] %v953_v15  ;;  %1297 = vst [vmem:[%s2029_s20 + $0x460] sm:$0xff] %v954_v16  ;;  %v408_v4 = vld [vmem:[%s1945_s15 + $0x520] sm:$0xff]  ;;  %v409_v5 = vld [vmem:[%s1945_s15 + $0x528] sm:$0xff]  ;;  %v2463_v16 = vpop.permute.xlu1 %731  ;;  %v976_v36 = vmul.f32 %v2412_v47, %v406_v62  ;;  %v977_v41 = vmul.f32 %v2412_v47, %v407_v3 }
 0x10b   : > { %1298 = vst [vmem:[%s2029_s20 + $0x468] sm:$0xff] %v955_v21  ;;  %1299 = vst [vmem:[%s2029_s20 + $0x470] sm:$0xff] %v956_v22  ;;  %v410_v6 = vld [vmem:[%s1945_s15 + $0x530] sm:$0xff]  ;;  %v411_v12 = vld [vmem:[%s1945_s15 + $0x538] sm:$0xff]  ;;  %v986_v21 = vmul.f32 %v2408_v44, %v416_v46  ;;  %v978_v43 = vmul.f32 %v2412_v47, %v408_v4  ;;  %v979_v44 = vmul.f32 %v2412_v47, %v409_v5 }
 0x10c   : > { %1300 = vst.msk [vmem:[%s2029_s20 + $0x478] sm:$0xff] %vm1164_vm0, %v957_v23  ;;  %1283 = vst [vmem:[%s2029_s20 + $0x3f0] sm:$0xff] %v940_v24  ;;  %v412_v13 = vld [vmem:[%s1945_s15 + $0x540] sm:$0xff]  ;;  %v413_v14 = vld [vmem:[%s1945_s15 + $0x548] sm:$0xff]  ;;  %v980_v45 = vmul.f32 %v2412_v47, %v410_v6  ;;  %v981_v52 = vmul.f32 %v2412_v47, %v411_v12 }
 0x10d   : > { %1284 = vst [vmem:[%s2029_s20 + $0x3f8] sm:$0xff] %v941_v29  ;;  %1285 = vst [vmem:[%s2029_s20 + $0x400] sm:$0xff] %v942_v30  ;;  %v414_v15 = vld [vmem:[%s1945_s15 + $0x550] sm:$0xff]  ;;  %v433_v22 = vld [vmem:[%s1945_s15 + $0x5e8] sm:$0xff]  ;;  %v982_v53 = vmul.f32 %v2412_v47, %v412_v13  ;;  %v983_v54 = vmul.f32 %v2412_v47, %v413_v14 }
 0x10e   : > { %1286 = vst [vmem:[%s2029_s20 + $0x408] sm:$0xff] %v943_v31  ;;  %1287 = vst [vmem:[%s2029_s20 + $0x410] sm:$0xff] %v944_v32  ;;  %v434_v23 = vld [vmem:[%s1945_s15 + $0x5f0] sm:$0xff]  ;;  %v435_v24 = vld [vmem:[%s1945_s15 + $0x5f8] sm:$0xff]  ;;  %v1003_v60 = vmul.f32 %v2463_v16, %v433_v22  ;;  %v2573_v22 = vpop.permute.xlu0 %746 }
 0x10f   : > { %1288 = vst [vmem:[%s2029_s20 + $0x418] sm:$0xff] %v945_v37  ;;  %1289 = vst [vmem:[%s2029_s20 + $0x420] sm:$0xff] %v946_v38  ;;  %v436_v25 = vld [vmem:[%s1945_s15 + $0x600] sm:$0xff]  ;;  %v437_v29 = vld [vmem:[%s1945_s15 + $0x608] sm:$0xff]  ;;  %v1005_v61 = vmul.f32 %v2463_v16, %v435_v24 }
 0x110   : > { %1290 = vst [vmem:[%s2029_s20 + $0x428] sm:$0xff] %v947_v39  ;;  %1291 = vst.msk [vmem:[%s2029_s20 + $0x430] sm:$0xff] %vm1164_vm0, %v948_v40  ;;  %v438_v30 = vld [vmem:[%s1945_s15 + $0x610] sm:$0xff]  ;;  %v439_v31 = vld [vmem:[%s1945_s15 + $0x618] sm:$0xff]  ;;  %v1006_v62 = vmul.f32 %v2463_v16, %v436_v25  ;;  %v1007_v3 = vmul.f32 %v2463_v16, %v437_v29 }
 0x111   : > { %1310 = vst [vmem:[%s2029_s20 + $0x4c8] sm:$0xff] %v967_v42  ;;  %1311 = vst [vmem:[%s2029_s20 + $0x4d0] sm:$0xff] %v968_v48  ;;  %v440_v32 = vld [vmem:[%s1945_s15 + $0x620] sm:$0xff]  ;;  %v441_v37 = vld [vmem:[%s1945_s15 + $0x628] sm:$0xff]  ;;  %v1008_v4 = vmul.f32 %v2463_v16, %v438_v30  ;;  %v1009_v5 = vmul.f32 %v2463_v16, %v439_v31 }
 0x112   : > { %1312 = vst [vmem:[%s2029_s20 + $0x4d8] sm:$0xff] %v969_v49  ;;  %1313 = vst [vmem:[%s2029_s20 + $0x4e0] sm:$0xff] %v970_v50  ;;  %v424_v38 = vld [vmem:[%s1945_s15 + $0x5a0] sm:$0xff]  ;;  %v425_v39 = vld [vmem:[%s1945_s15 + $0x5a8] sm:$0xff]  ;;  %v2517_v50 = vpop.permute.xlu1 %741  ;;  %v1010_v6 = vmul.f32 %v2463_v16, %v440_v32  ;;  %v1011_v12 = vmul.f32 %v2463_v16, %v441_v37 }
 0x113   : > { %1314 = vst [vmem:[%s2029_s20 + $0x4e8] sm:$0xff] %v971_v55  ;;  %1315 = vst [vmem:[%s2029_s20 + $0x4f0] sm:$0xff] %v972_v56  ;;  %v426_v40 = vld [vmem:[%s1945_s15 + $0x5b0] sm:$0xff]  ;;  %v427_v46 = vld [vmem:[%s1945_s15 + $0x5b8] sm:$0xff]  ;;  %v984_v55 = vmul.f32 %v2412_v47, %v414_v15  ;;  %v1004_v47 = vmul.f32 %v2463_v16, %v434_v23  ;;  %v994_v13 = vmul.f32 %v2465_v17, %v424_v38 }
 0x114   : > { %1316 = vst [vmem:[%s2029_s20 + $0x4f8] sm:$0xff] %v973_v57  ;;  %1317 = vst [vmem:[%s2029_s20 + $0x500] sm:$0xff] %v974_v58  ;;  %v428_v42 = vld [vmem:[%s1945_s15 + $0x5c0] sm:$0xff]  ;;  %v429_v48 = vld [vmem:[%s1945_s15 + $0x5c8] sm:$0xff]  ;;  %v995_v14 = vmul.f32 %v2465_v17, %v425_v39  ;;  %v996_v15 = vmul.f32 %v2465_v17, %v426_v40  ;;  %v997_v23 = vmul.f32 %v2465_v17, %v427_v46 }
 0x115   : > { %1318 = vst.msk [vmem:[%s2029_s20 + $0x508] sm:$0xff] %vm1164_vm0, %v975_v63  ;;  %1301 = vst [vmem:[%s2029_s20 + $0x480] sm:$0xff] %v958_v0  ;;  %v430_v49 = vld [vmem:[%s1945_s15 + $0x5d0] sm:$0xff]  ;;  %v431_v56 = vld [vmem:[%s1945_s15 + $0x5d8] sm:$0xff]  ;;  %v998_v24 = vmul.f32 %v2465_v17, %v428_v42  ;;  %v999_v25 = vmul.f32 %v2465_v17, %v429_v48 }
 0x116   : > { %1302 = vst [vmem:[%s2029_s20 + $0x488] sm:$0xff] %v959_v1  ;;  %1303 = vst [vmem:[%s2029_s20 + $0x490] sm:$0xff] %v960_v2  ;;  %v432_v57 = vld [vmem:[%s1945_s15 + $0x5e0] sm:$0xff]  ;;  %v451_v58 = vld [vmem:[%s1945_s15 + $0x678] sm:$0xff]  ;;  %v1001_v30 = vmul.f32 %v2465_v17, %v431_v56 }
 0x117   : > { %1304 = vst [vmem:[%s2029_s20 + $0x498] sm:$0xff] %v961_v7  ;;  %1305 = vst [vmem:[%s2029_s20 + $0x4a0] sm:$0xff] %v962_v9  ;;  %v452_v59 = vld [vmem:[%s1945_s15 + $0x680] sm:$0xff]  ;;  %v453_v63 = vld [vmem:[%s1945_s15 + $0x688] sm:$0xff]  ;;  %v1002_v31 = vmul.f32 %v2465_v17, %v432_v57  ;;  %v1021_v32 = vmul.f32 %v2517_v50, %v451_v58  ;;  %v2627_v57 = vpop.permute.xlu0 %756 }
 0x118   : > { %1306 = vst [vmem:[%s2029_s20 + $0x4a8] sm:$0xff] %v963_v10  ;;  %1307 = vst [vmem:[%s2029_s20 + $0x4b0] sm:$0xff] %v964_v11  ;;  %v454_v0 = vld [vmem:[%s1945_s15 + $0x690] sm:$0xff]  ;;  %v455_v1 = vld [vmem:[%s1945_s15 + $0x698] sm:$0xff] }
 0x119   : > { %1308 = vst [vmem:[%s2029_s20 + $0x4b8] sm:$0xff] %v965_v18  ;;  %1309 = vst.msk [vmem:[%s2029_s20 + $0x4c0] sm:$0xff] %vm1164_vm0, %v966_v19  ;;  %v456_v2 = vld [vmem:[%s1945_s15 + $0x6a0] sm:$0xff]  ;;  %v457_v7 = vld [vmem:[%s1945_s15 + $0x6a8] sm:$0xff]  ;;  %v1024_v38 = vmul.f32 %v2517_v50, %v454_v0  ;;  %v1025_v39 = vmul.f32 %v2517_v50, %v455_v1 }
 0x11a   : > { %1328 = vst [vmem:[%s2029_s20 + $0x558] sm:$0xff] %v985_v20  ;;  %1329 = vst [vmem:[%s2029_s20 + $0x560] sm:$0xff] %v986_v21  ;;  %v458_v9 = vld [vmem:[%s1945_s15 + $0x6b0] sm:$0xff]  ;;  %v459_v10 = vld [vmem:[%s1945_s15 + $0x6b8] sm:$0xff]  ;;  %v2571_v21 = vpop.permute.xlu1 %751  ;;  %v1026_v40 = vmul.f32 %v2517_v50, %v456_v2  ;;  %v1027_v46 = vmul.f32 %v2517_v50, %v457_v7 }
 0x11b   : > { %1330 = vst [vmem:[%s2029_s20 + $0x568] sm:$0xff] %v987_v8  ;;  %1331 = vst [vmem:[%s2029_s20 + $0x570] sm:$0xff] %v988_v26  ;;  %v442_v11 = vld [vmem:[%s1945_s15 + $0x630] sm:$0xff]  ;;  %v443_v18 = vld [vmem:[%s1945_s15 + $0x638] sm:$0xff]  ;;  %v1000_v8 = vmul.f32 %v2465_v17, %v430_v49  ;;  %v1023_v17 = vmul.f32 %v2517_v50, %v453_v63  ;;  %v1028_v42 = vmul.f32 %v2517_v50, %v458_v9 }
 0x11c   : > { %1332 = vst [vmem:[%s2029_s20 + $0x578] sm:$0xff] %v989_v27  ;;  %1333 = vst [vmem:[%s2029_s20 + $0x580] sm:$0xff] %v990_v28  ;;  %v444_v19 = vld [vmem:[%s1945_s15 + $0x640] sm:$0xff]  ;;  %v445_v20 = vld [vmem:[%s1945_s15 + $0x648] sm:$0xff]  ;;  %v1029_v48 = vmul.f32 %v2517_v50, %v459_v10  ;;  %v1012_v49 = vmul.f32 %v2519_v51, %v442_v11 }
 0x11d   : > { %1334 = vst [vmem:[%s2029_s20 + $0x588] sm:$0xff] %v991_v33  ;;  %1335 = vst [vmem:[%s2029_s20 + $0x590] sm:$0xff] %v992_v34  ;;  %v446_v16 = vld [vmem:[%s1945_s15 + $0x650] sm:$0xff]  ;;  %v447_v26 = vld [vmem:[%s1945_s15 + $0x658] sm:$0xff]  ;;  %v1022_v33 = vmul.f32 %v2517_v50, %v452_v59  ;;  %v1013_v50 = vmul.f32 %v2519_v51, %v443_v18  ;;  %v1014_v58 = vmul.f32 %v2519_v51, %v444_v19 }
 0x11e   : > { %1336 = vst.msk [vmem:[%s2029_s20 + $0x598] sm:$0xff] %vm1164_vm0, %v993_v35  ;;  %1319 = vst [vmem:[%s2029_s20 + $0x510] sm:$0xff] %v976_v36  ;;  %v448_v27 = vld [vmem:[%s1945_s15 + $0x660] sm:$0xff]  ;;  %v449_v28 = vld [vmem:[%s1945_s15 + $0x668] sm:$0xff]  ;;  %v2625_v56 = vpop.permute.xlu1 %761  ;;  %v1015_v59 = vmul.f32 %v2519_v51, %v445_v20  ;;  %v1017_v0 = vmul.f32 %v2519_v51, %v447_v26 }
 0x11f   : > { %1320 = vst [vmem:[%s2029_s20 + $0x518] sm:$0xff] %v977_v41  ;;  %1321 = vst [vmem:[%s2029_s20 + $0x520] sm:$0xff] %v978_v43  ;;  %v450_v29 = vld [vmem:[%s1945_s15 + $0x670] sm:$0xff]  ;;  %v469_v34 = vld [vmem:[%s1945_s15 + $0x708] sm:$0xff]  ;;  %v1018_v1 = vmul.f32 %v2519_v51, %v448_v27  ;;  %v1019_v2 = vmul.f32 %v2519_v51, %v449_v28 }
 0x120   : > { %1322 = vst [vmem:[%s2029_s20 + $0x528] sm:$0xff] %v979_v44  ;;  %1323 = vst [vmem:[%s2029_s20 + $0x530] sm:$0xff] %v980_v45  ;;  %v470_v35 = vld [vmem:[%s1945_s15 + $0x710] sm:$0xff]  ;;  %v471_v36 = vld [vmem:[%s1945_s15 + $0x718] sm:$0xff]  ;;  %v1039_v9 = vmul.f32 %v2571_v21, %v469_v34  ;;  %v2693_v34 = vpop.permute.xlu0 %766 }
 0x121   : > { %1324 = vst [vmem:[%s2029_s20 + $0x538] sm:$0xff] %v981_v52  ;;  %1325 = vst [vmem:[%s2029_s20 + $0x540] sm:$0xff] %v982_v53  ;;  %v472_v37 = vld [vmem:[%s1945_s15 + $0x720] sm:$0xff]  ;;  %v473_v41 = vld [vmem:[%s1945_s15 + $0x728] sm:$0xff]  ;;  %v1041_v10 = vmul.f32 %v2571_v21, %v471_v36 }
 0x122   : > { %1326 = vst [vmem:[%s2029_s20 + $0x548] sm:$0xff] %v983_v54  ;;  %1327 = vst.msk [vmem:[%s2029_s20 + $0x550] sm:$0xff] %vm1164_vm0, %v984_v55  ;;  %v474_v43 = vld [vmem:[%s1945_s15 + $0x730] sm:$0xff]  ;;  %v475_v44 = vld [vmem:[%s1945_s15 + $0x738] sm:$0xff]  ;;  %v1042_v11 = vmul.f32 %v2571_v21, %v472_v37  ;;  %v1043_v18 = vmul.f32 %v2571_v21, %v473_v41  ;;  %v2679_v26 = vpop.permute.xlu1 %771 }
 0x123   : > { %1346 = vst [vmem:[%s2029_s20 + $0x5e8] sm:$0xff] %v1003_v60  ;;  %1347 = vst [vmem:[%s2029_s20 + $0x5f0] sm:$0xff] %v1004_v47  ;;  %v476_v45 = vld [vmem:[%s1945_s15 + $0x740] sm:$0xff]  ;;  %v477_v52 = vld [vmem:[%s1945_s15 + $0x748] sm:$0xff]  ;;  %v1016_v60 = vmul.f32 %v2519_v51, %v446_v16  ;;  %v1044_v19 = vmul.f32 %v2571_v21, %v474_v43  ;;  %v1045_v20 = vmul.f32 %v2571_v21, %v475_v44 }
 0x124   : > { %1348 = vst [vmem:[%s2029_s20 + $0x5f8] sm:$0xff] %v1005_v61  ;;  %1349 = vst [vmem:[%s2029_s20 + $0x600] sm:$0xff] %v1006_v62  ;;  %v460_v53 = vld [vmem:[%s1945_s15 + $0x6c0] sm:$0xff]  ;;  %v461_v54 = vld [vmem:[%s1945_s15 + $0x6c8] sm:$0xff]  ;;  %v1046_v16 = vmul.f32 %v2571_v21, %v476_v45  ;;  %v1047_v27 = vmul.f32 %v2571_v21, %v477_v52 }
 0x125   : > { %1350 = vst [vmem:[%s2029_s20 + $0x608] sm:$0xff] %v1007_v3  ;;  %1351 = vst [vmem:[%s2029_s20 + $0x610] sm:$0xff] %v1008_v4  ;;  %v462_v55 = vld [vmem:[%s1945_s15 + $0x6d0] sm:$0xff]  ;;  %v463_v47 = vld [vmem:[%s1945_s15 + $0x6d8] sm:$0xff]  ;;  %v1020_v3 = vmul.f32 %v2519_v51, %v450_v29  ;;  %v1040_v51 = vmul.f32 %v2571_v21, %v470_v35  ;;  %v1030_v28 = vmul.f32 %v2573_v22, %v460_v53 }
 0x126   : > { %1352 = vst [vmem:[%s2029_s20 + $0x618] sm:$0xff] %v1009_v5  ;;  %1353 = vst [vmem:[%s2029_s20 + $0x620] sm:$0xff] %v1010_v6  ;;  %v464_v61 = vld [vmem:[%s1945_s15 + $0x6e0] sm:$0xff]  ;;  %v465_v62 = vld [vmem:[%s1945_s15 + $0x6e8] sm:$0xff]  ;;  %v1031_v29 = vmul.f32 %v2573_v22, %v461_v54  ;;  %v1033_v35 = vmul.f32 %v2573_v22, %v463_v47 }
 0x127   : > { %1354 = vst.msk [vmem:[%s2029_s20 + $0x628] sm:$0xff] %vm1164_vm0, %v1011_v12  ;;  %1337 = vst [vmem:[%s2029_s20 + $0x5a0] sm:$0xff] %v994_v13  ;;  %v466_v63 = vld [vmem:[%s1945_s15 + $0x6f0] sm:$0xff]  ;;  %v467_v4 = vld [vmem:[%s1945_s15 + $0x6f8] sm:$0xff]  ;;  %v1034_v36 = vmul.f32 %v2573_v22, %v464_v61  ;;  %v1035_v37 = vmul.f32 %v2573_v22, %v465_v62 }
 0x128   : > { %1338 = vst [vmem:[%s2029_s20 + $0x5a8] sm:$0xff] %v995_v14  ;;  %1339 = vst [vmem:[%s2029_s20 + $0x5b0] sm:$0xff] %v996_v15  ;;  %v468_v5 = vld [vmem:[%s1945_s15 + $0x700] sm:$0xff]  ;;  %v487_v6 = vld [vmem:[%s1945_s15 + $0x798] sm:$0xff]  ;;  %v1037_v43 = vmul.f32 %v2573_v22, %v467_v4  ;;  %v2745_v4 = vpop.permute.xlu1 %781 }
 0x129   : > { %1340 = vst [vmem:[%s2029_s20 + $0x5b8] sm:$0xff] %v997_v23  ;;  %1341 = vst [vmem:[%s2029_s20 + $0x5c0] sm:$0xff] %v998_v24  ;;  %v488_v7 = vld [vmem:[%s1945_s15 + $0x7a0] sm:$0xff]  ;;  %v489_v12 = vld [vmem:[%s1945_s15 + $0x7a8] sm:$0xff]  ;;  %v1038_v44 = vmul.f32 %v2573_v22, %v468_v5  ;;  %v1057_v45 = vmul.f32 %v2625_v56, %v487_v6 }
 0x12a   : > { %1342 = vst [vmem:[%s2029_s20 + $0x5c8] sm:$0xff] %v999_v25  ;;  %1343 = vst [vmem:[%s2029_s20 + $0x5d0] sm:$0xff] %v1000_v8  ;;  %v490_v13 = vld [vmem:[%s1945_s15 + $0x7b0] sm:$0xff]  ;;  %v491_v14 = vld [vmem:[%s1945_s15 + $0x7b8] sm:$0xff] }
 0x12b   : > { %1344 = vst [vmem:[%s2029_s20 + $0x5d8] sm:$0xff] %v1001_v30  ;;  %1345 = vst.msk [vmem:[%s2029_s20 + $0x5e0] sm:$0xff] %vm1164_vm0, %v1002_v31  ;;  %v492_v15 = vld [vmem:[%s1945_s15 + $0x7c0] sm:$0xff]  ;;  %v493_v23 = vld [vmem:[%s1945_s15 + $0x7c8] sm:$0xff]  ;;  %v1032_v30 = vmul.f32 %v2573_v22, %v462_v55  ;;  %v1060_v53 = vmul.f32 %v2625_v56, %v490_v13  ;;  %v1061_v54 = vmul.f32 %v2625_v56, %v491_v14 }
 0x12c   : > { %1364 = vst [vmem:[%s2029_s20 + $0x678] sm:$0xff] %v1021_v32  ;;  %1365 = vst [vmem:[%s2029_s20 + $0x680] sm:$0xff] %v1022_v33  ;;  %v494_v24 = vld [vmem:[%s1945_s15 + $0x7d0] sm:$0xff]  ;;  %v495_v25 = vld [vmem:[%s1945_s15 + $0x7d8] sm:$0xff]  ;;  %v1062_v55 = vmul.f32 %v2625_v56, %v492_v15  ;;  %v1063_v47 = vmul.f32 %v2625_v56, %v493_v23  ;;  %v2772_v23 = vpop.permute.xlu0 %776 }
 0x12d   : > { %1366 = vst [vmem:[%s2029_s20 + $0x688] sm:$0xff] %v1023_v17  ;;  %1367 = vst [vmem:[%s2029_s20 + $0x690] sm:$0xff] %v1024_v38  ;;  %v478_v8 = vld [vmem:[%s1945_s15 + $0x750] sm:$0xff]  ;;  %v479_v31 = vld [vmem:[%s1945_s15 + $0x758] sm:$0xff]  ;;  %v1036_v17 = vmul.f32 %v2573_v22, %v466_v63  ;;  %v1059_v22 = vmul.f32 %v2625_v56, %v489_v12  ;;  %v1064_v61 = vmul.f32 %v2625_v56, %v494_v24 }
 0x12e   : > { %1368 = vst [vmem:[%s2029_s20 + $0x698] sm:$0xff] %v1025_v39  ;;  %1369 = vst [vmem:[%s2029_s20 + $0x6a0] sm:$0xff] %v1026_v40  ;;  %v480_v32 = vld [vmem:[%s1945_s15 + $0x760] sm:$0xff]  ;;  %v481_v33 = vld [vmem:[%s1945_s15 + $0x768] sm:$0xff]  ;;  %v1065_v62 = vmul.f32 %v2625_v56, %v495_v25  ;;  %v1048_v63 = vmul.f32 %v2627_v57, %v478_v8 }
 0x12f   : > { %1370 = vst [vmem:[%s2029_s20 + $0x6a8] sm:$0xff] %v1027_v46  ;;  %1371 = vst [vmem:[%s2029_s20 + $0x6b0] sm:$0xff] %v1028_v42  ;;  %v482_v21 = vld [vmem:[%s1945_s15 + $0x770] sm:$0xff]  ;;  %v483_v38 = vld [vmem:[%s1945_s15 + $0x778] sm:$0xff]  ;;  %v1058_v46 = vmul.f32 %v2625_v56, %v488_v7  ;;  %v1049_v56 = vmul.f32 %v2627_v57, %v479_v31  ;;  %v1050_v5 = vmul.f32 %v2627_v57, %v480_v32 }
 0x130   : > { %1372 = vst.msk [vmem:[%s2029_s20 + $0x6b8] sm:$0xff] %vm1164_vm0, %v1029_v48  ;;  %1355 = vst [vmem:[%s2029_s20 + $0x630] sm:$0xff] %v1012_v49  ;;  %v484_v39 = vld [vmem:[%s1945_s15 + $0x780] sm:$0xff]  ;;  %v485_v40 = vld [vmem:[%s1945_s15 + $0x788] sm:$0xff]  ;;  %v1051_v6 = vmul.f32 %v2627_v57, %v481_v33  ;;  %v1052_v7 = vmul.f32 %v2627_v57, %v482_v21  ;;  %v1053_v12 = vmul.f32 %v2627_v57, %v483_v38 }
 0x131   : > { %1356 = vst [vmem:[%s2029_s20 + $0x638] sm:$0xff] %v1013_v50  ;;  %1357 = vst [vmem:[%s2029_s20 + $0x640] sm:$0xff] %v1014_v58  ;;  %v486_v41 = vld [vmem:[%s1945_s15 + $0x790] sm:$0xff]  ;;  %v505_v42 = vld [vmem:[%s1945_s15 + $0x828] sm:$0xff]  ;;  %v1054_v13 = vmul.f32 %v2627_v57, %v484_v39  ;;  %v1055_v14 = vmul.f32 %v2627_v57, %v485_v40 }
 0x132   : > { %1358 = vst [vmem:[%s2029_s20 + $0x648] sm:$0xff] %v1015_v59  ;;  %1359 = vst [vmem:[%s2029_s20 + $0x650] sm:$0xff] %v1016_v60  ;;  %v506_v48 = vld [vmem:[%s1945_s15 + $0x830] sm:$0xff]  ;;  %v507_v49 = vld [vmem:[%s1945_s15 + $0x838] sm:$0xff]  ;;  %v1056_v15 = vmul.f32 %v2627_v57, %v486_v41  ;;  %v1075_v57 = vmul.f32 %v2679_v26, %v505_v42 }
 0x133   : > { %1360 = vst [vmem:[%s2029_s20 + $0x658] sm:$0xff] %v1017_v0  ;;  %1361 = vst [vmem:[%s2029_s20 + $0x660] sm:$0xff] %v1018_v1  ;;  %v508_v52 = vld [vmem:[%s1945_s15 + $0x840] sm:$0xff]  ;;  %v509_v50 = vld [vmem:[%s1945_s15 + $0x848] sm:$0xff]  ;;  %v1076_v24 = vmul.f32 %v2679_v26, %v506_v48  ;;  %v1077_v25 = vmul.f32 %v2679_v26, %v507_v49 }
 0x134   : > { %1362 = vst [vmem:[%s2029_s20 + $0x668] sm:$0xff] %v1019_v2  ;;  %1363 = vst.msk [vmem:[%s2029_s20 + $0x670] sm:$0xff] %vm1164_vm0, %v1020_v3  ;;  %v510_v58 = vld [vmem:[%s1945_s15 + $0x850] sm:$0xff]  ;;  %v511_v59 = vld [vmem:[%s1945_s15 + $0x858] sm:$0xff]  ;;  %v1078_v8 = vmul.f32 %v2679_v26, %v508_v52  ;;  %v1079_v31 = vmul.f32 %v2679_v26, %v509_v50 }
 0x135   : > { %1382 = vst [vmem:[%s2029_s20 + $0x708] sm:$0xff] %v1039_v9  ;;  %1383 = vst [vmem:[%s2029_s20 + $0x710] sm:$0xff] %v1040_v51  ;;  %v512_v60 = vld [vmem:[%s1945_s15 + $0x860] sm:$0xff]  ;;  %v513_v0 = vld [vmem:[%s1945_s15 + $0x868] sm:$0xff]  ;;  %v1080_v32 = vmul.f32 %v2679_v26, %v510_v58  ;;  %v1081_v33 = vmul.f32 %v2679_v26, %v511_v59 }
 0x136   : > { %1384 = vst [vmem:[%s2029_s20 + $0x718] sm:$0xff] %v1041_v10  ;;  %1385 = vst [vmem:[%s2029_s20 + $0x720] sm:$0xff] %v1042_v11  ;;  %v496_v1 = vld [vmem:[%s1945_s15 + $0x7e0] sm:$0xff]  ;;  %v497_v2 = vld [vmem:[%s1945_s15 + $0x7e8] sm:$0xff]  ;;  %v1082_v21 = vmul.f32 %v2679_v26, %v512_v60  ;;  %v1083_v38 = vmul.f32 %v2679_v26, %v513_v0 }
 0x137   : > { %1386 = vst [vmem:[%s2029_s20 + $0x728] sm:$0xff] %v1043_v18  ;;  %1387 = vst [vmem:[%s2029_s20 + $0x730] sm:$0xff] %v1044_v19  ;;  %v498_v3 = vld [vmem:[%s1945_s15 + $0x7f0] sm:$0xff]  ;;  %v499_v9 = vld [vmem:[%s1945_s15 + $0x7f8] sm:$0xff]  ;;  %v1066_v39 = vmul.f32 %v2693_v34, %v496_v1  ;;  %v1067_v40 = vmul.f32 %v2693_v34, %v497_v2 }
 0x138   : > { %1388 = vst [vmem:[%s2029_s20 + $0x738] sm:$0xff] %v1045_v20  ;;  %1389 = vst [vmem:[%s2029_s20 + $0x740] sm:$0xff] %v1046_v16  ;;  %v500_v51 = vld [vmem:[%s1945_s15 + $0x800] sm:$0xff]  ;;  %v501_v10 = vld [vmem:[%s1945_s15 + $0x808] sm:$0xff]  ;;  %v1068_v41 = vmul.f32 %v2693_v34, %v498_v3  ;;  %v1069_v26 = vmul.f32 %v2693_v34, %v499_v9 }
 0x139   : > { %1390 = vst.msk [vmem:[%s2029_s20 + $0x748] sm:$0xff] %vm1164_vm0, %v1047_v27  ;;  %1373 = vst [vmem:[%s2029_s20 + $0x6c0] sm:$0xff] %v1030_v28  ;;  %v502_v11 = vld [vmem:[%s1945_s15 + $0x810] sm:$0xff]  ;;  %v503_v18 = vld [vmem:[%s1945_s15 + $0x818] sm:$0xff]  ;;  %v1070_v42 = vmul.f32 %v2693_v34, %v500_v51  ;;  %v1071_v48 = vmul.f32 %v2693_v34, %v501_v10 }
 0x13a   : > { %1374 = vst [vmem:[%s2029_s20 + $0x6c8] sm:$0xff] %v1031_v29  ;;  %1375 = vst [vmem:[%s2029_s20 + $0x6d0] sm:$0xff] %v1032_v30  ;;  %v504_v19 = vld [vmem:[%s1945_s15 + $0x820] sm:$0xff]  ;;  %v523_v20 = vld [vmem:[%s1945_s15 + $0x8b8] sm:$0xff]  ;;  %v1072_v49 = vmul.f32 %v2693_v34, %v502_v11  ;;  %v1073_v50 = vmul.f32 %v2693_v34, %v503_v18 }
 0x13b   : > { %1376 = vst [vmem:[%s2029_s20 + $0x6d8] sm:$0xff] %v1033_v35  ;;  %1377 = vst [vmem:[%s2029_s20 + $0x6e0] sm:$0xff] %v1034_v36  ;;  %v524_v16 = vld [vmem:[%s1945_s15 + $0x8c0] sm:$0xff]  ;;  %v525_v27 = vld [vmem:[%s1945_s15 + $0x8c8] sm:$0xff]  ;;  %v1074_v58 = vmul.f32 %v2693_v34, %v504_v19  ;;  %v1093_v59 = vmul.f32 %v2745_v4, %v523_v20 }
 0x13c   : > { %1378 = vst [vmem:[%s2029_s20 + $0x6e8] sm:$0xff] %v1035_v37  ;;  %1379 = vst [vmem:[%s2029_s20 + $0x6f0] sm:$0xff] %v1036_v17  ;;  %v526_v28 = vld [vmem:[%s1945_s15 + $0x8d0] sm:$0xff]  ;;  %v527_v29 = vld [vmem:[%s1945_s15 + $0x8d8] sm:$0xff]  ;;  %v1094_v60 = vmul.f32 %v2745_v4, %v524_v16  ;;  %v1095_v34 = vmul.f32 %v2745_v4, %v525_v27 }
 0x13d   : > { %1380 = vst [vmem:[%s2029_s20 + $0x6f8] sm:$0xff] %v1037_v43  ;;  %1381 = vst.msk [vmem:[%s2029_s20 + $0x700] sm:$0xff] %vm1164_vm0, %v1038_v44  ;;  %v528_v30 = vld [vmem:[%s1945_s15 + $0x8e0] sm:$0xff]  ;;  %v529_v35 = vld [vmem:[%s1945_s15 + $0x8e8] sm:$0xff]  ;;  %v1096_v0 = vmul.f32 %v2745_v4, %v526_v28  ;;  %v1097_v1 = vmul.f32 %v2745_v4, %v527_v29 }
 0x13e   : > { %1400 = vst [vmem:[%s2029_s20 + $0x798] sm:$0xff] %v1057_v45  ;;  %1401 = vst [vmem:[%s2029_s20 + $0x7a0] sm:$0xff] %v1058_v46  ;;  %v530_v36 = vld [vmem:[%s1945_s15 + $0x8f0] sm:$0xff]  ;;  %v531_v37 = vld [vmem:[%s1945_s15 + $0x8f8] sm:$0xff]  ;;  %v1098_v2 = vmul.f32 %v2745_v4, %v528_v30  ;;  %v1099_v9 = vmul.f32 %v2745_v4, %v529_v35 }
 0x13f   : > { %1402 = vst [vmem:[%s2029_s20 + $0x7a8] sm:$0xff] %v1059_v22  ;;  %1403 = vst [vmem:[%s2029_s20 + $0x7b0] sm:$0xff] %v1060_v53  ;;  %v514_v17 = vld [vmem:[%s1945_s15 + $0x870] sm:$0xff]  ;;  %v515_v43 = vld [vmem:[%s1945_s15 + $0x878] sm:$0xff]  ;;  %v1100_v51 = vmul.f32 %v2745_v4, %v530_v36  ;;  %v1101_v10 = vmul.f32 %v2745_v4, %v531_v37 }
 0x140   : > { %1404 = vst [vmem:[%s2029_s20 + $0x7b8] sm:$0xff] %v1061_v54  ;;  %1405 = vst [vmem:[%s2029_s20 + $0x7c0] sm:$0xff] %v1062_v55  ;;  %v516_v44 = vld [vmem:[%s1945_s15 + $0x880] sm:$0xff]  ;;  %v517_v45 = vld [vmem:[%s1945_s15 + $0x888] sm:$0xff]  ;;  %v2823_v55 = vpop.permute.xlu1 %791  ;;  %v1084_v11 = vmul.f32 %v2772_v23, %v514_v17  ;;  %v1085_v4 = vmul.f32 %v2772_v23, %v515_v43 }
 0x141   : > { %1406 = vst [vmem:[%s2029_s20 + $0x7c8] sm:$0xff] %v1063_v47  ;;  %1407 = vst [vmem:[%s2029_s20 + $0x7d0] sm:$0xff] %v1064_v61  ;;  %v518_v46 = vld [vmem:[%s1945_s15 + $0x890] sm:$0xff]  ;;  %v519_v52 = vld [vmem:[%s1945_s15 + $0x898] sm:$0xff]  ;;  %v1086_v18 = vmul.f32 %v2772_v23, %v516_v44  ;;  %v1087_v19 = vmul.f32 %v2772_v23, %v517_v45 }
 0x142   : > { %1408 = vst.msk [vmem:[%s2029_s20 + $0x7d8] sm:$0xff] %vm1164_vm0, %v1065_v62  ;;  %1391 = vst [vmem:[%s2029_s20 + $0x750] sm:$0xff] %v1048_v63  ;;  %v520_v22 = vld [vmem:[%s1945_s15 + $0x8a0] sm:$0xff]  ;;  %v521_v53 = vld [vmem:[%s1945_s15 + $0x8a8] sm:$0xff]  ;;  %v1088_v20 = vmul.f32 %v2772_v23, %v518_v46 }
 0x143   : > { %1392 = vst [vmem:[%s2029_s20 + $0x758] sm:$0xff] %v1049_v56  ;;  %1393 = vst [vmem:[%s2029_s20 + $0x760] sm:$0xff] %v1050_v5  ;;  %v522_v54 = vld [vmem:[%s1945_s15 + $0x8b0] sm:$0xff]  ;;  %v541_v47 = vld [vmem:[%s1945_s15 + $0x948] sm:$0xff]  ;;  %v1090_v27 = vmul.f32 %v2772_v23, %v520_v22  ;;  %v1091_v28 = vmul.f32 %v2772_v23, %v521_v53 }
 0x144   : > { %1394 = vst [vmem:[%s2029_s20 + $0x768] sm:$0xff] %v1051_v6  ;;  %1395 = vst [vmem:[%s2029_s20 + $0x770] sm:$0xff] %v1052_v7  ;;  %v542_v61 = vld [vmem:[%s1945_s15 + $0x950] sm:$0xff]  ;;  %v543_v62 = vld [vmem:[%s1945_s15 + $0x958] sm:$0xff]  ;;  %v2850_v7 = vpop.permute.xlu0 %786  ;;  %v1092_v29 = vmul.f32 %v2772_v23, %v522_v54  ;;  %v2898_v37 = vpop.permute.xlu1 %801 }
 0x145   : > { %1396 = vst [vmem:[%s2029_s20 + $0x778] sm:$0xff] %v1053_v12  ;;  %1397 = vst [vmem:[%s2029_s20 + $0x780] sm:$0xff] %v1054_v13  ;;  %v544_v63 = vld [vmem:[%s1945_s15 + $0x960] sm:$0xff]  ;;  %v545_v3 = vld [vmem:[%s1945_s15 + $0x968] sm:$0xff]  ;;  %v1113_v35 = vmul.f32 %v2823_v55, %v543_v62 }
 0x146   : > { %1398 = vst [vmem:[%s2029_s20 + $0x788] sm:$0xff] %v1055_v14  ;;  %1399 = vst.msk [vmem:[%s2029_s20 + $0x790] sm:$0xff] %vm1164_vm0, %v1056_v15  ;;  %v546_v56 = vld [vmem:[%s1945_s15 + $0x970] sm:$0xff]  ;;  %v547_v5 = vld [vmem:[%s1945_s15 + $0x978] sm:$0xff]  ;;  %v1114_v36 = vmul.f32 %v2823_v55, %v544_v63 }
 0x147   : > { %1418 = vst [vmem:[%s2029_s20 + $0x828] sm:$0xff] %v1075_v57  ;;  %1419 = vst [vmem:[%s2029_s20 + $0x830] sm:$0xff] %v1076_v24  ;;  %v548_v6 = vld [vmem:[%s1945_s15 + $0x980] sm:$0xff]  ;;  %v549_v12 = vld [vmem:[%s1945_s15 + $0x988] sm:$0xff]  ;;  %v1116_v43 = vmul.f32 %v2823_v55, %v546_v56  ;;  %v1117_v44 = vmul.f32 %v2823_v55, %v547_v5 }
 0x148   : > { %1420 = vst [vmem:[%s2029_s20 + $0x838] sm:$0xff] %v1077_v25  ;;  %1421 = vst [vmem:[%s2029_s20 + $0x840] sm:$0xff] %v1078_v8  ;;  %v532_v13 = vld [vmem:[%s1945_s15 + $0x900] sm:$0xff]  ;;  %v533_v14 = vld [vmem:[%s1945_s15 + $0x908] sm:$0xff]  ;;  %v1089_v8 = vmul.f32 %v2772_v23, %v519_v52  ;;  %v1112_v23 = vmul.f32 %v2823_v55, %v542_v61  ;;  %v1118_v45 = vmul.f32 %v2823_v55, %v548_v6  ;;  %v2925_v54 = vpop.permute.xlu0 %796 }
 0x149   : > { %1422 = vst [vmem:[%s2029_s20 + $0x848] sm:$0xff] %v1079_v31  ;;  %1423 = vst [vmem:[%s2029_s20 + $0x850] sm:$0xff] %v1080_v32  ;;  %v534_v15 = vld [vmem:[%s1945_s15 + $0x910] sm:$0xff]  ;;  %v535_v16 = vld [vmem:[%s1945_s15 + $0x918] sm:$0xff]  ;;  %v1102_v52 = vmul.f32 %v2850_v7, %v532_v13  ;;  %v1103_v22 = vmul.f32 %v2850_v7, %v533_v14 }
 0x14a   : > { %1424 = vst [vmem:[%s2029_s20 + $0x858] sm:$0xff] %v1081_v33  ;;  %1425 = vst [vmem:[%s2029_s20 + $0x860] sm:$0xff] %v1082_v21  ;;  %v536_v57 = vld [vmem:[%s1945_s15 + $0x920] sm:$0xff]  ;;  %v537_v24 = vld [vmem:[%s1945_s15 + $0x928] sm:$0xff]  ;;  %v1111_v21 = vmul.f32 %v2823_v55, %v541_v47  ;;  %v1104_v53 = vmul.f32 %v2850_v7, %v534_v15 }
 0x14b   : > { %1426 = vst.msk [vmem:[%s2029_s20 + $0x868] sm:$0xff] %vm1164_vm0, %v1083_v38  ;;  %1409 = vst [vmem:[%s2029_s20 + $0x7e0] sm:$0xff] %v1066_v39  ;;  %v538_v25 = vld [vmem:[%s1945_s15 + $0x930] sm:$0xff]  ;;  %v539_v30 = vld [vmem:[%s1945_s15 + $0x938] sm:$0xff]  ;;  %v1107_v47 = vmul.f32 %v2850_v7, %v537_v24 }
 0x14c   : > { %1410 = vst [vmem:[%s2029_s20 + $0x7e8] sm:$0xff] %v1067_v40  ;;  %1411 = vst [vmem:[%s2029_s20 + $0x7f0] sm:$0xff] %v1068_v41  ;;  %v540_v31 = vld [vmem:[%s1945_s15 + $0x940] sm:$0xff]  ;;  %v559_v32 = vld [vmem:[%s1945_s15 + $0x9d8] sm:$0xff]  ;;  %v1115_v41 = vmul.f32 %v2823_v55, %v545_v3  ;;  %v1108_v61 = vmul.f32 %v2850_v7, %v538_v25 }
 0x14d   : > { %1412 = vst [vmem:[%s2029_s20 + $0x7f8] sm:$0xff] %v1069_v26  ;;  %1413 = vst [vmem:[%s2029_s20 + $0x800] sm:$0xff] %v1070_v42  ;;  %v560_v33 = vld [vmem:[%s1945_s15 + $0x9e0] sm:$0xff]  ;;  %v561_v17 = vld [vmem:[%s1945_s15 + $0x9e8] sm:$0xff] }
 0x14e   : > { %1414 = vst [vmem:[%s2029_s20 + $0x808] sm:$0xff] %v1071_v48  ;;  %1415 = vst [vmem:[%s2029_s20 + $0x810] sm:$0xff] %v1072_v49  ;;  %v562_v38 = vld [vmem:[%s1945_s15 + $0x9f0] sm:$0xff]  ;;  %v563_v39 = vld [vmem:[%s1945_s15 + $0x9f8] sm:$0xff]  ;;  %v1119_v49 = vmul.f32 %v2823_v55, %v549_v12  ;;  %v1130_v3 = vmul.f32 %v2898_v37, %v560_v33 }
 0x14f   : > { %1416 = vst [vmem:[%s2029_s20 + $0x818] sm:$0xff] %v1073_v50  ;;  %1417 = vst.msk [vmem:[%s2029_s20 + $0x820] sm:$0xff] %vm1164_vm0, %v1074_v58  ;;  %v564_v40 = vld [vmem:[%s1945_s15 + $0xa00] sm:$0xff]  ;;  %v565_v46 = vld [vmem:[%s1945_s15 + $0xa08] sm:$0xff] }
 0x150   : > { %1436 = vst [vmem:[%s2029_s20 + $0x8b8] sm:$0xff] %v1093_v59  ;;  %1437 = vst [vmem:[%s2029_s20 + $0x8c0] sm:$0xff] %v1094_v60  ;;  %v566_v26 = vld [vmem:[%s1945_s15 + $0xa10] sm:$0xff]  ;;  %v567_v42 = vld [vmem:[%s1945_s15 + $0xa18] sm:$0xff]  ;;  %v1105_v59 = vmul.f32 %v2850_v7, %v535_v16  ;;  %v1106_v60 = vmul.f32 %v2850_v7, %v536_v57  ;;  %v1135_v14 = vmul.f32 %v2898_v37, %v565_v46 }
 0x151   : > { %1438 = vst [vmem:[%s2029_s20 + $0x8c8] sm:$0xff] %v1095_v34  ;;  %1439 = vst [vmem:[%s2029_s20 + $0x8d0] sm:$0xff] %v1096_v0  ;;  %v550_v48 = vld [vmem:[%s1945_s15 + $0x990] sm:$0xff]  ;;  %v551_v50 = vld [vmem:[%s1945_s15 + $0x998] sm:$0xff]  ;;  %v1109_v0 = vmul.f32 %v2850_v7, %v539_v30  ;;  %v1136_v15 = vmul.f32 %v2898_v37, %v566_v26 }
 0x152   : > { %1440 = vst [vmem:[%s2029_s20 + $0x8d8] sm:$0xff] %v1097_v1  ;;  %1441 = vst [vmem:[%s2029_s20 + $0x8e0] sm:$0xff] %v1098_v2  ;;  %v552_v58 = vld [vmem:[%s1945_s15 + $0x9a0] sm:$0xff]  ;;  %v553_v55 = vld [vmem:[%s1945_s15 + $0x9a8] sm:$0xff]  ;;  %v1110_v1 = vmul.f32 %v2850_v7, %v540_v31  ;;  %v1129_v2 = vmul.f32 %v2898_v37, %v559_v32  ;;  %v1131_v7 = vmul.f32 %v2898_v37, %v561_v17 }
 0x153   : > { %1442 = vst [vmem:[%s2029_s20 + $0x8e8] sm:$0xff] %v1099_v9  ;;  %1443 = vst [vmem:[%s2029_s20 + $0x8f0] sm:$0xff] %v1100_v51  ;;  %v554_v62 = vld [vmem:[%s1945_s15 + $0x9b0] sm:$0xff]  ;;  %v555_v63 = vld [vmem:[%s1945_s15 + $0x9b8] sm:$0xff]  ;;  %v1132_v9 = vmul.f32 %v2898_v37, %v562_v38  ;;  %v1133_v51 = vmul.f32 %v2898_v37, %v563_v39  ;;  %v1121_v24 = vmul.f32 %v2925_v54, %v551_v50 }
 0x154   : > { %1444 = vst.msk [vmem:[%s2029_s20 + $0x8f8] sm:$0xff] %vm1164_vm0, %v1101_v10  ;;  %1427 = vst [vmem:[%s2029_s20 + $0x870] sm:$0xff] %v1084_v11  ;;  %v556_v34 = vld [vmem:[%s1945_s15 + $0x9c0] sm:$0xff]  ;;  %v557_v56 = vld [vmem:[%s1945_s15 + $0x9c8] sm:$0xff]  ;;  %v1134_v10 = vmul.f32 %v2898_v37, %v564_v40  ;;  %v1122_v25 = vmul.f32 %v2925_v54, %v552_v58  ;;  %v1125_v31 = vmul.f32 %v2925_v54, %v555_v63 }
 0x155   : > { %1428 = vst [vmem:[%s2029_s20 + $0x878] sm:$0xff] %v1085_v4  ;;  %1429 = vst [vmem:[%s2029_s20 + $0x880] sm:$0xff] %v1086_v18  ;;  %v558_v5 = vld [vmem:[%s1945_s15 + $0x9d0] sm:$0xff]  ;;  %v577_v6 = vld [vmem:[%s1945_s15 + $0xa68] sm:$0xff]  ;;  %v1137_v4 = vmul.f32 %v2898_v37, %v567_v42  ;;  %v1120_v18 = vmul.f32 %v2925_v54, %v550_v48  ;;  %v1126_v32 = vmul.f32 %v2925_v54, %v556_v34 }
 0x156   : > { %1430 = vst [vmem:[%s2029_s20 + $0x888] sm:$0xff] %v1087_v19  ;;  %1431 = vst [vmem:[%s2029_s20 + $0x890] sm:$0xff] %v1088_v20  ;;  %v578_v11 = vld [vmem:[%s1945_s15 + $0xa70] sm:$0xff]  ;;  %v579_v12 = vld [vmem:[%s1945_s15 + $0xa78] sm:$0xff]  ;;  %v812_v19 = vpop.permute.xlu1 %811  ;;  %v1127_v33 = vmul.f32 %v2925_v54, %v557_v56 }
 0x157   : > { %1432 = vst [vmem:[%s2029_s20 + $0x898] sm:$0xff] %v1089_v8  ;;  %1433 = vst [vmem:[%s2029_s20 + $0x8a0] sm:$0xff] %v1090_v27  ;;  %v580_v13 = vld [vmem:[%s1945_s15 + $0xa80] sm:$0xff]  ;;  %v581_v20 = vld [vmem:[%s1945_s15 + $0xa88] sm:$0xff]  ;;  %v1123_v8 = vmul.f32 %v2925_v54, %v553_v55  ;;  %v1124_v27 = vmul.f32 %v2925_v54, %v554_v62  ;;  %v1147_v17 = vmul.f32 %v812_v19, %v577_v6 }
 0x158   : > { %1434 = vst [vmem:[%s2029_s20 + $0x8a8] sm:$0xff] %v1091_v28  ;;  %1435 = vst.msk [vmem:[%s2029_s20 + $0x8b0] sm:$0xff] %vm1164_vm0, %v1092_v29  ;;  %v582_v16 = vld [vmem:[%s1945_s15 + $0xa90] sm:$0xff]  ;;  %v583_v57 = vld [vmem:[%s1945_s15 + $0xa98] sm:$0xff]  ;;  %v1148_v38 = vmul.f32 %v812_v19, %v578_v11  ;;  %v1149_v39 = vmul.f32 %v812_v19, %v579_v12  ;;  %v1150_v40 = vmul.f32 %v812_v19, %v580_v13 }
 0x159   : > { %1454 = vst [vmem:[%s2029_s20 + $0x948] sm:$0xff] %v1111_v21  ;;  %1455 = vst [vmem:[%s2029_s20 + $0x950] sm:$0xff] %v1112_v23  ;;  %v584_v28 = vld [vmem:[%s1945_s15 + $0xaa0] sm:$0xff]  ;;  %v585_v29 = vld [vmem:[%s1945_s15 + $0xaa8] sm:$0xff]  ;;  %v1128_v21 = vmul.f32 %v2925_v54, %v558_v5  ;;  %v807_v23 = vpop.permute.xlu0 %806  ;;  %v1152_v46 = vmul.f32 %v812_v19, %v582_v16  ;;  %v1153_v26 = vmul.f32 %v812_v19, %v583_v57 }
 0x15a   : > { %1456 = vst [vmem:[%s2029_s20 + $0x958] sm:$0xff] %v1113_v35  ;;  %1457 = vst [vmem:[%s2029_s20 + $0x960] sm:$0xff] %v1114_v36  ;;  %v568_v30 = vld [vmem:[%s1945_s15 + $0xa20] sm:$0xff]  ;;  %v569_v35 = vld [vmem:[%s1945_s15 + $0xa28] sm:$0xff]  ;;  %v1154_v42 = vmul.f32 %v812_v19, %v584_v28 }
 0x15b   : > { %1458 = vst [vmem:[%s2029_s20 + $0x968] sm:$0xff] %v1115_v41  ;;  %1459 = vst [vmem:[%s2029_s20 + $0x970] sm:$0xff] %v1116_v43  ;;  %v570_v36 = vld [vmem:[%s1945_s15 + $0xa30] sm:$0xff]  ;;  %v571_v37 = vld [vmem:[%s1945_s15 + $0xa38] sm:$0xff] }
 0x15c   : > { %1460 = vst [vmem:[%s2029_s20 + $0x978] sm:$0xff] %v1117_v44  ;;  %1461 = vst [vmem:[%s2029_s20 + $0x980] sm:$0xff] %v1118_v45  ;;  %v572_v41 = vld [vmem:[%s1945_s15 + $0xa40] sm:$0xff]  ;;  %v573_v43 = vld [vmem:[%s1945_s15 + $0xa48] sm:$0xff]  ;;  %v1151_v45 = vmul.f32 %v812_v19, %v581_v20  ;;  %v1140_v54 = vmul.f32 %v807_v23, %v570_v36  ;;  %v1141_v50 = vmul.f32 %v807_v23, %v571_v37 }
 0x15d   : > { %1462 = vst.msk [vmem:[%s2029_s20 + $0x988] sm:$0xff] %vm1164_vm0, %v1119_v49  ;;  %1445 = vst [vmem:[%s2029_s20 + $0x900] sm:$0xff] %v1102_v52  ;;  %v574_v44 = vld [vmem:[%s1945_s15 + $0xa50] sm:$0xff]  ;;  %v575_v48 = vld [vmem:[%s1945_s15 + $0xa58] sm:$0xff]  ;;  %v1155_v52 = vmul.f32 %v812_v19, %v585_v29  ;;  %v1142_v58 = vmul.f32 %v807_v23, %v572_v41  ;;  %v1143_v55 = vmul.f32 %v807_v23, %v573_v43 }
 0x15e   : > { %1446 = vst [vmem:[%s2029_s20 + $0x908] sm:$0xff] %v1103_v22  ;;  %1447 = vst [vmem:[%s2029_s20 + $0x910] sm:$0xff] %v1104_v53  ;;  %v576_v49 = vld [vmem:[%s1945_s15 + $0xa60] sm:$0xff]  ;;  %v1138_v22 = vmul.f32 %v807_v23, %v568_v30  ;;  %v1139_v53 = vmul.f32 %v807_v23, %v569_v35 }
 0x15f   : > { %1448 = vst [vmem:[%s2029_s20 + $0x918] sm:$0xff] %v1105_v59  ;;  %1449 = vst [vmem:[%s2029_s20 + $0x920] sm:$0xff] %v1106_v60  ;;  %v1144_v59 = vmul.f32 %v807_v23, %v574_v44  ;;  %v1145_v60 = vmul.f32 %v807_v23, %v575_v48 }
 0x160   : > { %1450 = vst [vmem:[%s2029_s20 + $0x928] sm:$0xff] %v1107_v47  ;;  %1451 = vst [vmem:[%s2029_s20 + $0x930] sm:$0xff] %v1108_v61  ;;  %v1146_v47 = vmul.f32 %v807_v23, %v576_v49 }
 0x161   : > { %1452 = vst [vmem:[%s2029_s20 + $0x938] sm:$0xff] %v1109_v0  ;;  %1453 = vst.msk [vmem:[%s2029_s20 + $0x940] sm:$0xff] %vm1164_vm0, %v1110_v1 }
 0x162   : > { %1472 = vst [vmem:[%s2029_s20 + $0x9d8] sm:$0xff] %v1129_v2  ;;  %1473 = vst [vmem:[%s2029_s20 + $0x9e0] sm:$0xff] %v1130_v3 }
 0x163   : > { %1474 = vst [vmem:[%s2029_s20 + $0x9e8] sm:$0xff] %v1131_v7  ;;  %1475 = vst [vmem:[%s2029_s20 + $0x9f0] sm:$0xff] %v1132_v9 }
 0x164   : > { %1476 = vst [vmem:[%s2029_s20 + $0x9f8] sm:$0xff] %v1133_v51  ;;  %1477 = vst [vmem:[%s2029_s20 + $0xa00] sm:$0xff] %v1134_v10 }
 0x165   : > { %1478 = vst [vmem:[%s2029_s20 + $0xa08] sm:$0xff] %v1135_v14  ;;  %1479 = vst [vmem:[%s2029_s20 + $0xa10] sm:$0xff] %v1136_v15 }
 0x166   : > { %1480 = vst.msk [vmem:[%s2029_s20 + $0xa18] sm:$0xff] %vm1164_vm0, %v1137_v4  ;;  %1463 = vst [vmem:[%s2029_s20 + $0x990] sm:$0xff] %v1120_v18 }
 0x167   : > { %1464 = vst [vmem:[%s2029_s20 + $0x998] sm:$0xff] %v1121_v24  ;;  %1465 = vst [vmem:[%s2029_s20 + $0x9a0] sm:$0xff] %v1122_v25 }
 0x168   : > { %1466 = vst [vmem:[%s2029_s20 + $0x9a8] sm:$0xff] %v1123_v8  ;;  %1467 = vst [vmem:[%s2029_s20 + $0x9b0] sm:$0xff] %v1124_v27 }
 0x169   : > { %1468 = vst [vmem:[%s2029_s20 + $0x9b8] sm:$0xff] %v1125_v31  ;;  %1469 = vst [vmem:[%s2029_s20 + $0x9c0] sm:$0xff] %v1126_v32 }
 0x16a   : > { %1470 = vst [vmem:[%s2029_s20 + $0x9c8] sm:$0xff] %v1127_v33  ;;  %1471 = vst.msk [vmem:[%s2029_s20 + $0x9d0] sm:$0xff] %vm1164_vm0, %v1128_v21 }
 0x16b   : > { %1490 = vst [vmem:[%s2029_s20 + $0xa68] sm:$0xff] %v1147_v17  ;;  %1491 = vst [vmem:[%s2029_s20 + $0xa70] sm:$0xff] %v1148_v38 }
 0x16c   : > { %1492 = vst [vmem:[%s2029_s20 + $0xa78] sm:$0xff] %v1149_v39  ;;  %1493 = vst [vmem:[%s2029_s20 + $0xa80] sm:$0xff] %v1150_v40 }
 0x16d   : > { %1494 = vst [vmem:[%s2029_s20 + $0xa88] sm:$0xff] %v1151_v45  ;;  %1495 = vst [vmem:[%s2029_s20 + $0xa90] sm:$0xff] %v1152_v46 }
 0x16e   : > { %1496 = vst [vmem:[%s2029_s20 + $0xa98] sm:$0xff] %v1153_v26  ;;  %1497 = vst [vmem:[%s2029_s20 + $0xaa0] sm:$0xff] %v1154_v42 }
 0x16f   : > { %1498 = vst.msk [vmem:[%s2029_s20 + $0xaa8] sm:$0xff] %vm1164_vm0, %v1155_v52  ;;  %1481 = vst [vmem:[%s2029_s20 + $0xa20] sm:$0xff] %v1138_v22  ;;  %1506 = sbr.rel (!%p1885_p9) target bundleno = 400 (0x190), region = 36 }
 0x170   : > { %1482 = vst [vmem:[%s2029_s20 + $0xa28] sm:$0xff] %v1139_v53  ;;  %1483 = vst [vmem:[%s2029_s20 + $0xa30] sm:$0xff] %v1140_v54 }
 0x171   : > { %1484 = vst [vmem:[%s2029_s20 + $0xa38] sm:$0xff] %v1141_v50  ;;  %1485 = vst [vmem:[%s2029_s20 + $0xa40] sm:$0xff] %v1142_v58 }
 0x172   : > { %1486 = vst [vmem:[%s2029_s20 + $0xa48] sm:$0xff] %v1143_v55  ;;  %1487 = vst [vmem:[%s2029_s20 + $0xa50] sm:$0xff] %v1144_v59 }
 0x173   : > { %1488 = vst [vmem:[%s2029_s20 + $0xa58] sm:$0xff] %v1145_v60  ;;  %1489 = vst.msk [vmem:[%s2029_s20 + $0xa60] sm:$0xff] %vm1164_vm0, %v1146_v47 }
 0x174   : > { %s3118_s24 = smov (!%p1510_p8, %s1509_s24), 38 }
 0x175   : > { %s3037_s25 = smul.u32 1152, %s3118_s24 }
 0x177   : > { %s1515_s26 = ssub.s32 43776, %s3037_s25 }
 0x178   : > { %1516 = vsyncadd %s1500_s19, %s1515_s26  ;;  %p1635_p0 = scmp.ne.s32.totalorder %s3037_s25, 0  ;;  %s1651_s27 = smul.u32 43776, %s1806_s12 }
 0x179   : > { %s1523_s21 = sshll.u32 %s2029_s20, 4  ;;  %s1820_s15 = smov [#allocation5]   ;;  %s3050_s21 = int_to_ptr.vmem [resolvable:$true] %s1523_s21 }
 0x17a   : > { %s3048_s6 = scalar_lea.hbm %s3102_s2, %s1651_s27  ;;  %s1734_s7 = scalar_lea.vmem %s3050_s21, %s3037_s25 }
 0x17b   : > { %p1735_p9 = scmp.ne.s32.totalorder %s3050_s21, %s1734_s7  ;;  %s1738_s28 = sshll.u32 %s1820_s15, 4  ;;  %s1739_s28 = int_to_ptr.vmem [resolvable:$false] %s1738_s28 }
 0x17c   : > { %s1740_s12 = scalar_lea.vmem %s1739_s28, 87552  ;;  %p1741_p10 = scmp.lt.s32.totalorder %s3050_s21, %s1739_s28 }
 0x17d   : > { %p1736_p6 = pnand %p1735_p9, %p1635_p0  ;;  %p1742_p13 = scmp.lt.s32.totalorder %s1740_s12, %s1734_s7 }
 0x17f   : > { %p1737_p7 = pneg %p1736_p6  ;;  %p1743_p1 = por %p1742_p13, %p1741_p10 }
 0x181   : > { %p1744_p2 = pnand %p1743_p1, %p1737_p7 }
 0x183   : > { %1747 = shalt.err (!%p1744_p2)
}
 0x184   : > { %s1748_s30 = scalar_lea.hbm %s3048_s6, %s3037_s25  ;;  %s1752_s16 = scalar_lea.hbm %s3102_s2, 86400 }
 0x185   : > { %p1749_p3 = scmp.ne.s32.totalorder %s3048_s6, %s1748_s30  ;;  %p1753_p12 = scmp.lt.s32.totalorder %s3048_s6, %s3102_s2 }
 0x186   : > { %p1754_p8 = scmp.lt.s32.totalorder %s1752_s16, %s1748_s30 }
 0x187   : > { %p1750_p4 = pnand %p1749_p3, %p1635_p0 }
 0x188   : > { %p1755_p9 = por %p1754_p8, %p1753_p12 }
 0x189   : > { %p1751_p5 = pneg %p1750_p4 }
 0x18b   : > { %p1756_p6 = pnand %p1755_p9, %p1751_p5 }
 0x18d   : > { %1759 = shalt.err (!%p1756_p6)
}
 0x18e   : > { %s1821_s24 = smov 1152   ;;  %s1822_s26 = smov 72  }
 0x18f   : > { %1529 = dma.vmem_to_hbm [thread:$0]  (%p1635_p0), %s3050_s21, %s3037_s25, %s3048_s6, %s1500_s19, %s1821_s24, %s1821_s24, %s1822_s26  }
 0x190 PF: > { %s1538_s27 = sand.u32 1, %s1794_s9   ;;  %p3107_p7 = scmp.ge.s32.totalorder %s1814_s14, 2 }
 0x191   : > { %s1539_s29 = scalar_lea.sflag [#allocation4], %s1538_s27 }
 0x192   : > { %p1647_p10 = pnand %p3107_p7, %p1892_p11 }
 0x194   : > { %p1648_p13 = pneg %p1647_p10 }
 0x196   : > { %1789 = dma.done.wait (%p1648_p13), %s1539_s29, 43776  }
 0x197   : > { %1791 = vsyncadd (%p1648_p13), %s1539_s29, 4294923520  ;;  %s18_s14 = sadd.s32 1, %s1814_s14   ;;  %s3108_s9 = smov %s1798_s10 }
 0x198   : > { %p15_p1 = scmp.ge.s32.totalorder %s18_s14, 4   ;;  %s3109_s10 = smov %s1802_s11 }
 0x199   : > { %s3110_s11 = smov %s1890_s22  ;;  %s3111_s12 = smov %s1810_s13 }
 0x19a   : > { %s3112_s13 = smov %s3114_s17  ;;  %17 = sbr.rel (!%p15_p1) target bundleno = 6 (0x6), region = 76 }
 0x19f   :  { %1544 = vsyncpa [#allocation3], 1 }
 0x1a0   :  { %1546 = vsyncpa [#allocation3 + $0x1], 1 }
 0x1a1   :  { %1547 = vsyncpa [#allocation4], 1 }
 0x1a2   :  { %1549 = vsyncpa [#allocation4 + $0x1], 1 }

</bundles_post_ra>
